<compile_context>
chip_gen: v7x
topology: tpu7x:2x2x1
jax: 0.10.0
libtpu: 0.0.40
codegen_flags: <defaults>
</compile_context>

<pallas_src>
import functools

import numpy as np
import jax
import jax.numpy as jnp
from jax.experimental import pallas as pl
from jax.experimental.pallas import tpu as pltpu


def _interp_matrix(n_in, n_out):
    """Row-stochastic bilinear interpolation matrix, PyTorch align_corners=True."""
    A = np.zeros((n_out, n_in), dtype=np.float64)
    if n_out == 1 or n_in == 1:
        A[:, 0] = 1.0
        return A.astype(np.float32)
    scale = (n_in - 1) / (n_out - 1)
    for i in range(n_out):
        src = i * scale
        i0 = min(int(np.floor(src)), n_in - 1)
        i1 = min(i0 + 1, n_in - 1)
        w1 = src - i0
        A[i, i0] += 1.0 - w1
        A[i, i1] += w1
    return A.astype(np.float32)


def _upsample_matrix(H, W, pad):
    """(H*W, Hp*Wp) matrix M s.t. x_flat @ M == (zero-padded) bilinear x2 upsample,
    flattened row-major over the padded plane (Hp, Wp)."""
    H2, W2 = 2 * H, 2 * W
    ah = _interp_matrix(H, H2)                 # (H2, H)
    aw = _interp_matrix(W, W2)                 # (W2, W)
    km = np.kron(ah, aw)                       # (H2*W2, H*W)
    Hp, Wp = H2 + 2 * pad, W2 + 2 * pad
    if pad > 0:
        full = np.zeros((Hp, Wp, H * W), np.float32)
        full[pad:pad + H2, pad:pad + W2, :] = km.reshape(H2, W2, H * W)
        km = full.reshape(Hp * Wp, H * W)
    return np.ascontiguousarray(km.T.astype(np.float32))   # (H*W, Hp*Wp)


def _deconv_kernel(x_ref, up_ref, w_ref, b_ref, o_ref, *, K, Wp, S2):
    # x_ref : (NB*Cin, S1)            folded-batch input planes (lane-dense)
    # up_ref: (S1, S2)                fused bilinear-x2 (+pad) matrix, constant across the grid
    # w_ref : (K*K, NB*Cout, NB*Cin)  conv taps, block-diagonal over the folded batches
    # b_ref : (NB*Cout, 1)            bias, tiled over the folded batches
    # o_ref : (NB*Cout, S2)           conv output over the flattened padded plane

    # 1) bilinear x2 upsample: one MXU matmul (M = NB*Cin, K = S1, lanes = S2)
    u = jnp.dot(x_ref[...], up_ref[...], preferred_element_type=jnp.float32)   # (NB*Cin, S2)

    # 2) 3x3 conv as 9 tap matmuls over lane-rolled copies of u (XLU rolls, no im2col slab,
    #    no scratch stores).  roll by (S2-off) == left shift by off, so output column p sees
    #    u[:, p+off]; the wrapped tail only lands in columns the wrapper crops away
    #    (stride-1 "valid" conv: the deepest column any kept output touches is exactly S2-1).
    acc = None
    for ki in range(K):
        for kj in range(K):
            off = ki * Wp + kj
            u_t = u if off == 0 else pltpu.roll(u, shift=S2 - off, axis=1)
            part = jnp.dot(w_ref[ki * K + kj], u_t, preferred_element_type=jnp.float32)
            acc = part if acc is None else acc + part

    # 3) bias + store (full-width unmasked stores: S2 is a multiple of 128)
    o_ref[...] = (acc + b_ref[...]).astype(o_ref.dtype)


@functools.partial(jax.jit, static_argnames=("padding", "batch_chunks"))
def deconv_forward(x, weight, bias, padding=0, batch_chunks=None):
    """x: (N, Cin, H, W) f32; weight: (Cout, Cin, K, K); bias: (Cout,)."""
    N, Cin, H, W = x.shape
    Cout, _, K, _ = weight.shape
    H2, W2 = 2 * H, 2 * W
    Hp, Wp = H2 + 2 * padding, W2 + 2 * padding
    Ho, Wo = Hp - K + 1, Wp - K + 1
    S1, S2 = H * W, Hp * Wp
    # stride-1 "valid" conv over the flattened padded plane: the deepest input column any kept
    # output touches is exactly S2-1, so the roll wrap-around never leaks into kept outputs.
    assert (Ho - 1 + K - 1) * Wp + (Wo - 1 + K - 1) == S2 - 1

    # Batch folding: grid=(1,) folds everything (best on single-TC v5e/v6e); grid=(2,) when
    # there are >=2 batches per chunk and the folded blocks stay (8,128)-tileable, so v7x's
    # two TensorCores each take half the batch.
    if batch_chunks is None:
        nb2 = N // 2
        batch_chunks = 2 if (N >= 4 and N % 2 == 0
                             and (nb2 * Cin) % 8 == 0 and (nb2 * Cout) % 8 == 0) else 1
    assert N % batch_chunks == 0
    NB = N // batch_chunks

    up_mat = jnp.asarray(_upsample_matrix(H, W, padding))                      # (S1, S2)
    # conv taps (K*K, Cout, Cin), block-diagonal over the NB folded batches
    w_taps = jnp.transpose(weight, (2, 3, 0, 1)).reshape(K * K, Cout, Cin).astype(jnp.float32)
    w_bd = jnp.einsum('ab,toc->taobc', jnp.eye(NB, dtype=jnp.float32),
                      w_taps).reshape(K * K, NB * Cout, NB * Cin)
    b_tiled = jnp.tile(bias.astype(jnp.float32), NB).reshape(NB * Cout, 1)
    x2d = x.reshape(N * Cin, S1).astype(jnp.float32)

    kernel = functools.partial(_deconv_kernel, K=K, Wp=Wp, S2=S2)

    out2d = pl.pallas_call(
        kernel,
        out_shape=jax.ShapeDtypeStruct((N * Cout, S2), jnp.float32),
        grid=(batch_chunks,),
        in_specs=[
            pl.BlockSpec((NB * Cin, S1), lambda g: (g, 0)),
            pl.BlockSpec((S1, S2), lambda g: (0, 0)),                       # constant block
            pl.BlockSpec((K * K, NB * Cout, NB * Cin), lambda g: (0, 0, 0)),  # constant block
            pl.BlockSpec((NB * Cout, 1), lambda g: (0, 0)),                 # constant block
        ],
        out_specs=pl.BlockSpec((NB * Cout, S2), lambda g: (g, 0)),
        compiler_params=pltpu.CompilerParams(
            dimension_semantics=("parallel",),
            vmem_limit_bytes=32 * 1024 * 1024,
        ),
    )(x2d, up_mat, w_bd, b_tiled)

    # crop the flattened padded plane to the valid conv output and restore NCHW
    return out2d.reshape(N, Cout, Hp, Wp)[:, :, :Ho, :Wo]


if __name__ == "__main__":
    key = jax.random.PRNGKey(0)
    k1, k2, k3 = jax.random.split(key, 3)

    N, Cin, H, W = 2, 4, 16, 16
    Cout, K, padding = 8, 3, 0     # deconv(input_channel=4, output_channel=8), module defaults

    x = jax.random.normal(k1, (N, Cin, H, W), jnp.float32)
    # deterministic Conv2d-style init (uniform in +/- 1/sqrt(fan_in))
    fan_in = Cin * K * K
    bound = float(1.0 / np.sqrt(fan_in))
    weight = jax.random.uniform(k2, (Cout, Cin, K, K), jnp.float32, -bound, bound)
    bias = jax.random.uniform(k3, (Cout,), jnp.float32, -bound, bound)

    y = jax.block_until_ready(deconv_forward(x, weight, bias, padding=padding))

    # pure-JAX reference (same math: separable bilinear upsample + valid conv)
    ah = jnp.asarray(_interp_matrix(H, 2 * H))
    aw = jnp.asarray(_interp_matrix(W, 2 * W))
    up_ref = jnp.einsum('ph,nchw,qw->ncpq', ah, x, aw)
    ref = jax.lax.conv_general_dilated(
        up_ref, weight, window_strides=(1, 1),
        padding=[(padding, padding), (padding, padding)],
        dimension_numbers=('NCHW', 'OIHW', 'NCHW')) + bias[None, :, None, None]
    ref = jax.block_until_ready(ref)

    expect = (N, Cout, 2 * H + 2 * padding - K + 1, 2 * W + 2 * padding - K + 1)
    assert y.shape == ref.shape == expect, (y.shape, ref.shape, expect)
    err = float(np.max(np.abs(np.asarray(y) - np.asarray(ref))))
    assert np.allclose(np.asarray(y), np.asarray(ref), atol=5e-4, rtol=5e-4), err
    print("KERNEL_OK")
</pallas_src>

<mosaic_0001>
module attributes {stable_mosaic.version = 11 : i64} {
  func.func @_deconv_kernel(%arg0: i32, %arg1: memref<8x256xf32, #tpu.memory_space<vmem>>, %arg2: memref<256x1024xf32, #tpu.memory_space<vmem>>, %arg3: memref<9x16x8xf32, #tpu.memory_space<vmem>>, %arg4: memref<16x1xf32, #tpu.memory_space<vmem>>, %arg5: memref<16x1024xf32, #tpu.memory_space<vmem>>) attributes {dimension_semantics = [#tpu.dimension_semantics<parallel>], iteration_bounds = array<i64: 1>, scalar_prefetch = 0 : i64, scratch_operands = 0 : i64, tpu.core_type = #tpu.core_type<tc>, window_params = [{transform_indices = @transform_0, window_bounds = array<i64: 8, 256>}, {pipeline_mode = #tpu.pipeline_mode<synchronous>, transform_indices = @transform_1, window_bounds = array<i64: 256, 1024>}, {pipeline_mode = #tpu.pipeline_mode<synchronous>, transform_indices = @transform_2, window_bounds = array<i64: 9, 16, 8>}, {pipeline_mode = #tpu.pipeline_mode<synchronous>, transform_indices = @transform_3, window_bounds = array<i64: 16, 1>}, {transform_indices = @transform_4, window_bounds = array<i64: 16, 1024>}]} {
    %c0 = arith.constant 0 : index
    %c0_0 = arith.constant 0 : index
    %0 = vector.load %arg1[%c0, %c0_0] : memref<8x256xf32, #tpu.memory_space<vmem>>, vector<8x256xf32>
    %c0_1 = arith.constant 0 : index
    %c0_2 = arith.constant 0 : index
    %1 = vector.load %arg2[%c0_1, %c0_2] : memref<256x1024xf32, #tpu.memory_space<vmem>>, vector<256x1024xf32>
    %cst = arith.constant dense<0.000000e+00> : vector<8x1024xf32>
    %2 = tpu.matmul %0, %1, %cst {dimension_numbers = #tpu.dot_dimension_numbers<[1], [0], [0], [1], [0, 0, 1, 1], [], []>} : vector<8x256xf32>, vector<256x1024xf32>, vector<8x1024xf32> -> vector<8x1024xf32>
    %c0_3 = arith.constant 0 : index
    %c0_4 = arith.constant 0 : index
    %c0_5 = arith.constant 0 : index
    %3 = vector.load %arg3[%c0_3, %c0_4, %c0_5] : memref<9x16x8xf32, #tpu.memory_space<vmem>>, vector<1x16x8xf32>
    %4 = vector.shape_cast %3 : vector<1x16x8xf32> to vector<16x8xf32>
    %cst_6 = arith.constant dense<0.000000e+00> : vector<16x1024xf32>
    %5 = tpu.matmul %4, %2, %cst_6 {dimension_numbers = #tpu.dot_dimension_numbers<[1], [0], [0], [1], [0, 0, 1, 1], [], []>} : vector<16x8xf32>, vector<8x1024xf32>, vector<16x1024xf32> -> vector<16x1024xf32>
    %c1023_i32 = arith.constant 1023 : i32
    %6 = tpu.dynamic_rotate %2 by %c1023_i32 dim 1 : vector<8x1024xf32>, i32 -> vector<8x1024xf32>
    %c1 = arith.constant 1 : index
    %c0_7 = arith.constant 0 : index
    %c0_8 = arith.constant 0 : index
    %7 = vector.load %arg3[%c1, %c0_7, %c0_8] : memref<9x16x8xf32, #tpu.memory_space<vmem>>, vector<1x16x8xf32>
    %8 = vector.shape_cast %7 : vector<1x16x8xf32> to vector<16x8xf32>
    %cst_9 = arith.constant dense<0.000000e+00> : vector<16x1024xf32>
    %9 = tpu.matmul %8, %6, %cst_9 {dimension_numbers = #tpu.dot_dimension_numbers<[1], [0], [0], [1], [0, 0, 1, 1], [], []>} : vector<16x8xf32>, vector<8x1024xf32>, vector<16x1024xf32> -> vector<16x1024xf32>
    %10 = arith.addf %5, %9 : vector<16x1024xf32>
    %c1022_i32 = arith.constant 1022 : i32
    %11 = tpu.dynamic_rotate %2 by %c1022_i32 dim 1 : vector<8x1024xf32>, i32 -> vector<8x1024xf32>
    %c2 = arith.constant 2 : index
    %c0_10 = arith.constant 0 : index
    %c0_11 = arith.constant 0 : index
    %12 = vector.load %arg3[%c2, %c0_10, %c0_11] : memref<9x16x8xf32, #tpu.memory_space<vmem>>, vector<1x16x8xf32>
    %13 = vector.shape_cast %12 : vector<1x16x8xf32> to vector<16x8xf32>
    %cst_12 = arith.constant dense<0.000000e+00> : vector<16x1024xf32>
    %14 = tpu.matmul %13, %11, %cst_12 {dimension_numbers = #tpu.dot_dimension_numbers<[1], [0], [0], [1], [0, 0, 1, 1], [], []>} : vector<16x8xf32>, vector<8x1024xf32>, vector<16x1024xf32> -> vector<16x1024xf32>
    %15 = arith.addf %10, %14 : vector<16x1024xf32>
    %c992_i32 = arith.constant 992 : i32
    %16 = tpu.dynamic_rotate %2 by %c992_i32 dim 1 : vector<8x1024xf32>, i32 -> vector<8x1024xf32>
    %c3 = arith.constant 3 : index
    %c0_13 = arith.constant 0 : index
    %c0_14 = arith.constant 0 : index
    %17 = vector.load %arg3[%c3, %c0_13, %c0_14] : memref<9x16x8xf32, #tpu.memory_space<vmem>>, vector<1x16x8xf32>
    %18 = vector.shape_cast %17 : vector<1x16x8xf32> to vector<16x8xf32>
    %cst_15 = arith.constant dense<0.000000e+00> : vector<16x1024xf32>
    %19 = tpu.matmul %18, %16, %cst_15 {dimension_numbers = #tpu.dot_dimension_numbers<[1], [0], [0], [1], [0, 0, 1, 1], [], []>} : vector<16x8xf32>, vector<8x1024xf32>, vector<16x1024xf32> -> vector<16x1024xf32>
    %20 = arith.addf %15, %19 : vector<16x1024xf32>
    %c991_i32 = arith.constant 991 : i32
    %21 = tpu.dynamic_rotate %2 by %c991_i32 dim 1 : vector<8x1024xf32>, i32 -> vector<8x1024xf32>
    %c4 = arith.constant 4 : index
    %c0_16 = arith.constant 0 : index
    %c0_17 = arith.constant 0 : index
    %22 = vector.load %arg3[%c4, %c0_16, %c0_17] : memref<9x16x8xf32, #tpu.memory_space<vmem>>, vector<1x16x8xf32>
    %23 = vector.shape_cast %22 : vector<1x16x8xf32> to vector<16x8xf32>
    %cst_18 = arith.constant dense<0.000000e+00> : vector<16x1024xf32>
    %24 = tpu.matmul %23, %21, %cst_18 {dimension_numbers = #tpu.dot_dimension_numbers<[1], [0], [0], [1], [0, 0, 1, 1], [], []>} : vector<16x8xf32>, vector<8x1024xf32>, vector<16x1024xf32> -> vector<16x1024xf32>
    %25 = arith.addf %20, %24 : vector<16x1024xf32>
    %c990_i32 = arith.constant 990 : i32
    %26 = tpu.dynamic_rotate %2 by %c990_i32 dim 1 : vector<8x1024xf32>, i32 -> vector<8x1024xf32>
    %c5 = arith.constant 5 : index
    %c0_19 = arith.constant 0 : index
    %c0_20 = arith.constant 0 : index
    %27 = vector.load %arg3[%c5, %c0_19, %c0_20] : memref<9x16x8xf32, #tpu.memory_space<vmem>>, vector<1x16x8xf32>
    %28 = vector.shape_cast %27 : vector<1x16x8xf32> to vector<16x8xf32>
    %cst_21 = arith.constant dense<0.000000e+00> : vector<16x1024xf32>
    %29 = tpu.matmul %28, %26, %cst_21 {dimension_numbers = #tpu.dot_dimension_numbers<[1], [0], [0], [1], [0, 0, 1, 1], [], []>} : vector<16x8xf32>, vector<8x1024xf32>, vector<16x1024xf32> -> vector<16x1024xf32>
    %30 = arith.addf %25, %29 : vector<16x1024xf32>
    %c960_i32 = arith.constant 960 : i32
    %31 = tpu.dynamic_rotate %2 by %c960_i32 dim 1 : vector<8x1024xf32>, i32 -> vector<8x1024xf32>
    %c6 = arith.constant 6 : index
    %c0_22 = arith.constant 0 : index
    %c0_23 = arith.constant 0 : index
    %32 = vector.load %arg3[%c6, %c0_22, %c0_23] : memref<9x16x8xf32, #tpu.memory_space<vmem>>, vector<1x16x8xf32>
    %33 = vector.shape_cast %32 : vector<1x16x8xf32> to vector<16x8xf32>
    %cst_24 = arith.constant dense<0.000000e+00> : vector<16x1024xf32>
    %34 = tpu.matmul %33, %31, %cst_24 {dimension_numbers = #tpu.dot_dimension_numbers<[1], [0], [0], [1], [0, 0, 1, 1], [], []>} : vector<16x8xf32>, vector<8x1024xf32>, vector<16x1024xf32> -> vector<16x1024xf32>
    %35 = arith.addf %30, %34 : vector<16x1024xf32>
    %c959_i32 = arith.constant 959 : i32
    %36 = tpu.dynamic_rotate %2 by %c959_i32 dim 1 : vector<8x1024xf32>, i32 -> vector<8x1024xf32>
    %c7 = arith.constant 7 : index
    %c0_25 = arith.constant 0 : index
    %c0_26 = arith.constant 0 : index
    %37 = vector.load %arg3[%c7, %c0_25, %c0_26] : memref<9x16x8xf32, #tpu.memory_space<vmem>>, vector<1x16x8xf32>
    %38 = vector.shape_cast %37 : vector<1x16x8xf32> to vector<16x8xf32>
    %cst_27 = arith.constant dense<0.000000e+00> : vector<16x1024xf32>
    %39 = tpu.matmul %38, %36, %cst_27 {dimension_numbers = #tpu.dot_dimension_numbers<[1], [0], [0], [1], [0, 0, 1, 1], [], []>} : vector<16x8xf32>, vector<8x1024xf32>, vector<16x1024xf32> -> vector<16x1024xf32>
    %40 = arith.addf %35, %39 : vector<16x1024xf32>
    %c958_i32 = arith.constant 958 : i32
    %41 = tpu.dynamic_rotate %2 by %c958_i32 dim 1 : vector<8x1024xf32>, i32 -> vector<8x1024xf32>
    %c8 = arith.constant 8 : index
    %c0_28 = arith.constant 0 : index
    %c0_29 = arith.constant 0 : index
    %42 = vector.load %arg3[%c8, %c0_28, %c0_29] : memref<9x16x8xf32, #tpu.memory_space<vmem>>, vector<1x16x8xf32>
    %43 = vector.shape_cast %42 : vector<1x16x8xf32> to vector<16x8xf32>
    %cst_30 = arith.constant dense<0.000000e+00> : vector<16x1024xf32>
    %44 = tpu.matmul %43, %41, %cst_30 {dimension_numbers = #tpu.dot_dimension_numbers<[1], [0], [0], [1], [0, 0, 1, 1], [], []>} : vector<16x8xf32>, vector<8x1024xf32>, vector<16x1024xf32> -> vector<16x1024xf32>
    %45 = arith.addf %40, %44 : vector<16x1024xf32>
    %c0_31 = arith.constant 0 : index
    %c0_32 = arith.constant 0 : index
    %46 = vector.load %arg4[%c0_31, %c0_32] : memref<16x1xf32, #tpu.memory_space<vmem>>, vector<16x1xf32>
    %47 = vector.broadcast %46 : vector<16x1xf32> to vector<16x1024xf32>
    %48 = arith.addf %45, %47 : vector<16x1024xf32>
    %c0_33 = arith.constant 0 : index
    %c0_34 = arith.constant 0 : index
    %49 = vector.load %arg5[%c0_33, %c0_34] : memref<16x1024xf32, #tpu.memory_space<vmem>>, vector<16x1024xf32>
    tpu.vector_store %arg5[%c0_33, %c0_34], %48 {strides = array<i32>} : memref<16x1024xf32, #tpu.memory_space<vmem>>, vector<16x1024xf32>,
    return
  }
  func.func @transform_0(%arg0: i32) -> (i32, i32) {
    %c0_i32 = arith.constant 0 : i32
    %c0_i32_0 = arith.constant 0 : i32
    return %arg0, %c0_i32 : i32, i32
  }
  func.func @transform_1(%arg0: i32) -> (i32, i32) {
    %c0_i32 = arith.constant 0 : i32
    %c0_i32_0 = arith.constant 0 : i32
    %c0_i32_1 = arith.constant 0 : i32
    return %c0_i32, %c0_i32_0 : i32, i32
  }
  func.func @transform_2(%arg0: i32) -> (i32, i32, i32) {
    %c0_i32 = arith.constant 0 : i32
    %c0_i32_0 = arith.constant 0 : i32
    %c0_i32_1 = arith.constant 0 : i32
    %c0_i32_2 = arith.constant 0 : i32
    return %c0_i32, %c0_i32_0, %c0_i32_1 : i32, i32, i32
  }
  func.func @transform_3(%arg0: i32) -> (i32, i32) {
    %c0_i32 = arith.constant 0 : i32
    %c0_i32_0 = arith.constant 0 : i32
    %c0_i32_1 = arith.constant 0 : i32
    return %c0_i32, %c0_i32_0 : i32, i32
  }
  func.func @transform_4(%arg0: i32) -> (i32, i32) {
    %c0_i32 = arith.constant 0 : i32
    %c0_i32_0 = arith.constant 0 : i32
    return %arg0, %c0_i32 : i32, i32
  }
}

</mosaic_0001>

<bundles_post_ra>
// kernel: tile.8
= control target key start
LH: loop header
LB: loop body
LE: loop exit
PB: predicated region body
PF: predicated region fallthrough
CT: control target
= control target key end

     0   :  { %s22_s0 = inlined_call_operand.vmem [shape: f32[8], index: 0, kind: input, shape index: {}]   ;;  %s23_s1 = inlined_call_operand.vmem [shape: f32[2,8], index: 1, kind: output, shape index: {}]  }
   0x1   :  { %v4_v0 = vld [vmem:[%s22_s0] ss:$0 sm:$0xff] }
   0x2   :  { %5 = vst [vmem:[%s23_s1] sm:$0x3] %v4_v0 }

// kernel: tile.0
= control target key start
LH: loop header
LB: loop body
LE: loop exit
PB: predicated region body
PF: predicated region fallthrough
CT: control target
= control target key end

     0   :  { %s66_s8 = smov 125   ;;  %vm7_vm0 = vcmask 7168   ;;  %s67_s11 = smov 126   ;;  %s117_s0 = inlined_call_operand.vmem [shape: f32[2,8], index: 0, kind: input, shape index: {}]   ;;  %s118_s1 = inlined_call_operand.vmem [shape: f32[16,1], index: 1, kind: output, shape index: {}]  }
   0x1   :  { %v4_v0 = vld [vmem:[%s117_s0] sm:$0x3]  ;;  %s65_s0 = smov 127   ;;  %s68_s12 = smov 124  }
   0x2   :  { %5 = vst [vmem:[#allocation0] sm:$0x3] %v4_v0  ;;  %s69_s13 = smov 123   ;;  %s70_s14 = smov 122  }
   0x3   :  { %s71_s15 = smov 121  }
   0x9   :  { %v9_v1 = vld [vmem:[#allocation0] sm:$0x3]  }
   0xa   :  { %v21_v2 = vld [vmem:[#allocation0] sm:$0x3]   ;;  %10 = vrot.lane.b32.xlu0 %v9_v1, %s65_s0 }
   0xb   :  { %22 = vrot.lane.b32.xlu1 %v21_v2, %s66_s8  ;;  %v15_v3 = vld [vmem:[#allocation0] sm:$0x3]  }
   0xc   :  { %v27_v4 = vld [vmem:[#allocation0] sm:$0x3]  }
   0xd   :  { %v6_v5 = vld [vmem:[#allocation0] sm:$0x3]  }
   0xe   :  { %8 = vst.msk [vmem:[%s118_s1] ss:$8 sm:$0x3] %vm7_vm0, %v6_v5   ;;  %16 = vrot.lane.b32.xlu0 %v15_v3, %s67_s11  ;;  %v33_v6 = vld [vmem:[#allocation0] sm:$0x3]  }
   0xf   :  { %28 = vrot.lane.b32.xlu1 %v27_v4, %s68_s12  ;;  %v39_v7 = vld [vmem:[#allocation0] sm:$0x3]  }
  0x10   :  { %v45_v8 = vld [vmem:[#allocation0] sm:$0x3]  }
  0x12   :  { %34 = vrot.lane.b32.xlu0 %v33_v6, %s69_s13 }
  0x13   :  { %40 = vrot.lane.b32.xlu1 %v39_v7, %s70_s14 }
  0x16   :  { %46 = vrot.lane.b32.xlu0 %v45_v8, %s71_s15 }
  0x7c   :  { %v11_v9 = vpop.permute.xlu0 %10  }
  0x7d   :  { %v23_v10 = vpop.permute.xlu1 %22   ;;  %51 = vst.msk [vmem:[%s118_s1 + $0x1] ss:$8 sm:$0x3] %vm7_vm0, %v11_v9  }
  0x7e   :  { %53 = vst.msk [vmem:[%s118_s1 + $0x3] ss:$8 sm:$0x3] %vm7_vm0, %v23_v10  }
  0x80   :  { %v17_v11 = vpop.permute.xlu0 %16  }
  0x81   :  { %v29_v12 = vpop.permute.xlu1 %28   ;;  %52 = vst.msk [vmem:[%s118_s1 + $0x2] ss:$8 sm:$0x3] %vm7_vm0, %v17_v11  }
  0x82   :  { %54 = vst.msk [vmem:[%s118_s1 + $0x4] ss:$8 sm:$0x3] %vm7_vm0, %v29_v12  }
  0x84   :  { %v35_v13 = vpop.permute.xlu0 %34  }
  0x85   :  { %v41_v14 = vpop.permute.xlu1 %40   ;;  %55 = vst.msk [vmem:[%s118_s1 + $0x5] ss:$8 sm:$0x3] %vm7_vm0, %v35_v13  }
  0x86   :  { %56 = vst.msk [vmem:[%s118_s1 + $0x6] ss:$8 sm:$0x3] %vm7_vm0, %v41_v14  }
  0x88   :  { %v47_v15 = vpop.permute.xlu0 %46  }
  0x89   :  { %57 = vst.msk [vmem:[%s118_s1 + $0x7] ss:$8 sm:$0x3] %vm7_vm0, %v47_v15  }

// kernel: deconv_forward.1
= control target key start
LH: loop header
LB: loop body
LE: loop exit
PB: predicated region body
PF: predicated region fallthrough
CT: control target
= control target key end

     0   :  { %9 = vsyncpa [#allocation3], 0  ;;  %s4299_s15 = smov [#allocation2]   ;;  %s4869_s0 = inlined_call_operand.vmem [shape: f32[8,256], index: 0, kind: input, shape index: {}]   ;;  %s4870_s1 = inlined_call_operand.hbm [shape: f32[256,1024], index: 1, kind: input, shape index: {}]   ;;  %s4871_s2 = inlined_call_operand.vmem [shape: f32[9,16,8], index: 2, kind: input, shape index: {}]   ;;  %s4872_s3 = inlined_call_operand.vmem [shape: f32[16,1], index: 3, kind: input, shape index: {}]   ;;  %s4873_s4 = inlined_call_operand.vmem [shape: f32[16,1024], index: 4, kind: output, shape index: {}]  }
   0x1   :  { %s17_s16 = sshll.u32 %s4299_s15, 4  ;;  %s4275_s19 = scalar_lea.hbm %s4870_s1, 32768  ;;  %s18_s16 = int_to_ptr.vmem [resolvable:$true] %s17_s16 }
   0x2   :  { %p4276_p0 = scmp.ne.s32.totalorder %s4870_s1, %s4275_s19  ;;  %p4279_p1 = scmp.lt.u32.totalorder %s4275_s19, %s4870_s1 }
   0x4   :  { %p4281_p2 = pnand %p4279_p1, %p4276_p0 }
   0x6   :  { %4284 = shalt.err (!%p4281_p2)
}
   0x7   :  { %s4285_s24 = scalar_lea.vmem %s18_s16, 32768  ;;  %p4290_p4 = scmp.lt.s32.totalorder %s18_s16, %s18_s16 }
   0x8   :  { %p4286_p3 = scmp.ne.s32.totalorder %s18_s16, %s4285_s24  ;;  %p4291_p5 = scmp.lt.s32.totalorder %s4285_s24, %s4285_s24 }
   0xa   :  { %p4292_p6 = por %p4291_p5, %p4290_p4 }
   0xc   :  { %p4293_p7 = pnand %p4292_p6, %p4286_p3 }
   0xe   :  { %4296 = shalt.err (!%p4293_p7)
}
   0xf   :  { %s4300_s25 = smov 1024   ;;  %s4301_s26 = smov 64  }
  0x10   :  { %23 = dma.hbm_to_vmem [thread:$0]  %s4870_s1, 32768, %s18_s16, [#allocation3], %s4300_s25, %s4300_s25, %s4301_s26  }
  0x11   :  { %4297 = dma.done.wait [#allocation3], 32768  }
  0x12   :  { %4298 = vsyncadd [#allocation3], 4294934528  ;;  %v34_v0 = vld [vmem:[#allocation2 + $0x8] sm:$0xff]  ;;  %v36_v2 = vld [vmem:[#allocation2 + $0x18] sm:$0xff]  ;;  %s4304_s6 = smov 126   ;;  %s4305_s7 = smov 96  }
  0x13   :  { %v42_v1 = vld [vmem:[#allocation2 + $0x48] sm:$0xff]  ;;  %v44_v4 = vld [vmem:[#allocation2 + $0x58] sm:$0xff]  ;;  %v33_v5 = vld [vmem:[#allocation2] sm:$0xff]  ;;  %s4306_s8 = smov 95   ;;  %s4307_s9 = smov 94   ;;  %vm605_vm1 = vcmask 64512  }
  0x14   :  { %v3877_v3 = vpack.c.bf16 %v42_v1, %v34_v0  ;;  %v41_v6 = vld [vmem:[#allocation2 + $0x40] sm:$0xff]  ;;  %v3941_v7 = vpack.c.bf16 %v44_v4, %v36_v2  ;;  %v35_v9 = vld [vmem:[#allocation2 + $0x10] sm:$0xff]  ;;  %v50_v11 = vld [vmem:[#allocation2 + $0x88] sm:$0xff]  ;;  %s4308_s14 = smov 63   ;;  %s4309_s15 = smov 62  }
  0x15   :  { %v3879_v8 = vpack.c.bf16 %v41_v6, %v33_v5  ;;  %v43_v10 = vld [vmem:[#allocation2 + $0x50] sm:$0xff]  ;;  %v58_v13 = vld [vmem:[#allocation2 + $0xc8] sm:$0xff]  ;;  %v52_v14 = vld [vmem:[#allocation2 + $0x98] sm:$0xff] }
  0x16   :  { %3878 = vmatprep.subr.bf16.mxu0 %v3877_v3  ;;  %v3943_v12 = vpack.c.bf16 %v43_v10, %v35_v9  ;;  %v60_v15 = vld [vmem:[#allocation2 + $0xd8] sm:$0xff]  ;;  %3942 = vmatprep.subr.bf16.mxu1 %v3941_v7  ;;  %v3881_v16 = vpack.c.bf16 %v58_v13, %v50_v11  ;;  %v49_v18 = vld [vmem:[#allocation2 + $0x80] sm:$0xff]  ;;  %v51_v20 = vld [vmem:[#allocation2 + $0x90] sm:$0xff] }
  0x17   :  { %3880 = vmatpush1.bf16.msra.mxu0 %v3879_v8  ;;  %v3945_v17 = vpack.c.bf16 %v60_v15, %v52_v14  ;;  %v57_v19 = vld [vmem:[#allocation2 + $0xc0] sm:$0xff]  ;;  %v59_v22 = vld [vmem:[#allocation2 + $0xd0] sm:$0xff]  ;;  %v66_v23 = vld [vmem:[#allocation2 + $0x108] sm:$0xff] }
  0x18   :  { %3944 = vmatpush1.bf16.msra.mxu1 %v3943_v12  ;;  %v3883_v21 = vpack.c.bf16 %v57_v19, %v49_v18  ;;  %v74_v24 = vld [vmem:[#allocation2 + $0x148] sm:$0xff]  ;;  %3882 = vmatprep.subr.bf16.mxu0 %v3881_v16  ;;  %v3947_v25 = vpack.c.bf16 %v59_v22, %v51_v20  ;;  %v68_v27 = vld [vmem:[#allocation2 + $0x118] sm:$0xff]  ;;  %v65_v29 = vld [vmem:[#allocation2 + $0x100] sm:$0xff] }
  0x19   :  { %3946 = vmatprep.subr.bf16.mxu1 %v3945_v17  ;;  %v3885_v26 = vpack.c.bf16 %v74_v24, %v66_v23  ;;  %v76_v28 = vld [vmem:[#allocation2 + $0x158] sm:$0xff]  ;;  %v73_v31 = vld [vmem:[#allocation2 + $0x140] sm:$0xff]  ;;  %v67_v32 = vld [vmem:[#allocation2 + $0x110] sm:$0xff] }
  0x1a   :  { %v3949_v30 = vpack.c.bf16 %v76_v28, %v68_v27  ;;  %v75_v33 = vld [vmem:[#allocation2 + $0x150] sm:$0xff]  ;;  %v3887_v34 = vpack.c.bf16 %v73_v31, %v65_v29  ;;  %v82_v35 = vld [vmem:[#allocation2 + $0x188] sm:$0xff]  ;;  %v84_v37 = vld [vmem:[#allocation2 + $0x198] sm:$0xff] }
  0x1b   :  { %3884 = vmatpush1.bf16.msra.mxu0 %v3883_v21  ;;  %v90_v36 = vld [vmem:[#allocation2 + $0x1c8] sm:$0xff]  ;;  %v3951_v38 = vpack.c.bf16 %v75_v33, %v67_v32  ;;  %v92_v40 = vld [vmem:[#allocation2 + $0x1d8] sm:$0xff]  ;;  %v81_v41 = vld [vmem:[#allocation2 + $0x180] sm:$0xff] }
  0x1c   :  { %3948 = vmatpush1.bf16.msra.mxu1 %v3947_v25  ;;  %3886 = vmatprep.subr.bf16.mxu0 %v3885_v26  ;;  %v3889_v39 = vpack.c.bf16 %v90_v36, %v82_v35  ;;  %v89_v42 = vld [vmem:[#allocation2 + $0x1c0] sm:$0xff]  ;;  %v3953_v43 = vpack.c.bf16 %v92_v40, %v84_v37  ;;  %v83_v44 = vld [vmem:[#allocation2 + $0x190] sm:$0xff]  ;;  %v98_v46 = vld [vmem:[#allocation2 + $0x208] sm:$0xff] }
  0x1d   :  { %3950 = vmatprep.subr.bf16.mxu1 %v3949_v30  ;;  %v91_v45 = vld [vmem:[#allocation2 + $0x1d0] sm:$0xff]  ;;  %v106_v47 = vld [vmem:[#allocation2 + $0x248] sm:$0xff]  ;;  %v100_v48 = vld [vmem:[#allocation2 + $0x218] sm:$0xff]  ;;  %v3891_v50 = vpack.c.bf16 %v89_v42, %v81_v41 }
  0x1e   :  { %v108_v49 = vld [vmem:[#allocation2 + $0x258] sm:$0xff]  ;;  %v3955_v51 = vpack.c.bf16 %v91_v45, %v83_v44  ;;  %v3893_v52 = vpack.c.bf16 %v106_v47, %v98_v46  ;;  %v97_v53 = vld [vmem:[#allocation2 + $0x200] sm:$0xff]  ;;  %v99_v55 = vld [vmem:[#allocation2 + $0x210] sm:$0xff] }
  0x1f   :  { %3888 = vmatpush1.bf16.msra.mxu0 %v3887_v34  ;;  %v105_v54 = vld [vmem:[#allocation2 + $0x240] sm:$0xff]  ;;  %v3957_v56 = vpack.c.bf16 %v108_v49, %v100_v48  ;;  %v107_v57 = vld [vmem:[#allocation2 + $0x250] sm:$0xff]  ;;  %v114_v58 = vld [vmem:[#allocation2 + $0x288] sm:$0xff] }
  0x20   :  { %3952 = vmatpush1.bf16.msra.mxu1 %v3951_v38  ;;  %3890 = vmatprep.subr.bf16.mxu0 %v3889_v39  ;;  %v122_v59 = vld [vmem:[#allocation2 + $0x2c8] sm:$0xff]  ;;  %v116_v60 = vld [vmem:[#allocation2 + $0x298] sm:$0xff]  ;;  %v3895_v62 = vpack.c.bf16 %v105_v54, %v97_v53  ;;  %v3959_v63 = vpack.c.bf16 %v107_v57, %v99_v55  ;;  %v113_v1 = vld [vmem:[#allocation2 + $0x280] sm:$0xff] }
  0x21   :  { %3954 = vmatprep.subr.bf16.mxu1 %v3953_v43  ;;  %v124_v61 = vld [vmem:[#allocation2 + $0x2d8] sm:$0xff]  ;;  %v3897_v0 = vpack.c.bf16 %v122_v59, %v114_v58  ;;  %v121_v2 = vld [vmem:[#allocation2 + $0x2c0] sm:$0xff]  ;;  %v115_v3 = vld [vmem:[#allocation2 + $0x290] sm:$0xff] }
  0x22   :  { %v3961_v4 = vpack.c.bf16 %v124_v61, %v116_v60  ;;  %v123_v5 = vld [vmem:[#allocation2 + $0x2d0] sm:$0xff]  ;;  %v130_v6 = vld [vmem:[#allocation2 + $0x308] sm:$0xff]  ;;  %v132_v8 = vld [vmem:[#allocation2 + $0x318] sm:$0xff]  ;;  %v3899_v10 = vpack.c.bf16 %v121_v2, %v113_v1 }
  0x23   :  { %3892 = vmatpush1.bf16.msra.mxu0 %v3891_v50  ;;  %v138_v7 = vld [vmem:[#allocation2 + $0x348] sm:$0xff]  ;;  %v140_v9 = vld [vmem:[#allocation2 + $0x358] sm:$0xff]  ;;  %v3963_v11 = vpack.c.bf16 %v123_v5, %v115_v3  ;;  %v129_v13 = vld [vmem:[#allocation2 + $0x300] sm:$0xff] }
  0x24   :  { %3956 = vmatpush1.bf16.msra.mxu1 %v3955_v51  ;;  %3894 = vmatprep.subr.bf16.mxu0 %v3893_v52  ;;  %v3901_v12 = vpack.c.bf16 %v138_v7, %v130_v6  ;;  %v137_v14 = vld [vmem:[#allocation2 + $0x340] sm:$0xff]  ;;  %v131_v15 = vld [vmem:[#allocation2 + $0x310] sm:$0xff]  ;;  %v3965_v16 = vpack.c.bf16 %v140_v9, %v132_v8  ;;  %v146_v18 = vld [vmem:[#allocation2 + $0x388] sm:$0xff] }
  0x25   :  { %3958 = vmatprep.subr.bf16.mxu1 %v3957_v56  ;;  %v139_v17 = vld [vmem:[#allocation2 + $0x350] sm:$0xff]  ;;  %v154_v19 = vld [vmem:[#allocation2 + $0x3c8] sm:$0xff]  ;;  %v148_v20 = vld [vmem:[#allocation2 + $0x398] sm:$0xff]  ;;  %v3903_v22 = vpack.c.bf16 %v137_v14, %v129_v13 }
  0x26   :  { %v156_v21 = vld [vmem:[#allocation2 + $0x3d8] sm:$0xff]  ;;  %v3967_v23 = vpack.c.bf16 %v139_v17, %v131_v15  ;;  %v3905_v24 = vpack.c.bf16 %v154_v19, %v146_v18  ;;  %v145_v25 = vld [vmem:[#allocation2 + $0x380] sm:$0xff]  ;;  %v147_v27 = vld [vmem:[#allocation2 + $0x390] sm:$0xff] }
  0x27   :  { %3896 = vmatpush1.bf16.msra.mxu0 %v3895_v62  ;;  %v153_v26 = vld [vmem:[#allocation2 + $0x3c0] sm:$0xff]  ;;  %v3969_v28 = vpack.c.bf16 %v156_v21, %v148_v20  ;;  %v155_v29 = vld [vmem:[#allocation2 + $0x3d0] sm:$0xff]  ;;  %v162_v30 = vld [vmem:[#allocation2 + $0x408] sm:$0xff] }
  0x28   :  { %3960 = vmatpush1.bf16.msra.mxu1 %v3959_v63  ;;  %3898 = vmatprep.subr.bf16.mxu0 %v3897_v0  ;;  %v170_v31 = vld [vmem:[#allocation2 + $0x448] sm:$0xff]  ;;  %v164_v32 = vld [vmem:[#allocation2 + $0x418] sm:$0xff]  ;;  %v3907_v34 = vpack.c.bf16 %v153_v26, %v145_v25  ;;  %v3971_v35 = vpack.c.bf16 %v155_v29, %v147_v27  ;;  %v161_v37 = vld [vmem:[#allocation2 + $0x400] sm:$0xff] }
  0x29   :  { %3962 = vmatprep.subr.bf16.mxu1 %v3961_v4  ;;  %v172_v33 = vld [vmem:[#allocation2 + $0x458] sm:$0xff]  ;;  %v3909_v36 = vpack.c.bf16 %v170_v31, %v162_v30  ;;  %v169_v38 = vld [vmem:[#allocation2 + $0x440] sm:$0xff]  ;;  %v163_v39 = vld [vmem:[#allocation2 + $0x410] sm:$0xff] }
  0x2a   :  { %v3973_v40 = vpack.c.bf16 %v172_v33, %v164_v32  ;;  %v171_v41 = vld [vmem:[#allocation2 + $0x450] sm:$0xff]  ;;  %v178_v42 = vld [vmem:[#allocation2 + $0x488] sm:$0xff]  ;;  %v180_v44 = vld [vmem:[#allocation2 + $0x498] sm:$0xff]  ;;  %v3911_v46 = vpack.c.bf16 %v169_v38, %v161_v37 }
  0x2b   :  { %3900 = vmatpush1.bf16.msra.mxu0 %v3899_v10  ;;  %v186_v43 = vld [vmem:[#allocation2 + $0x4c8] sm:$0xff]  ;;  %v188_v45 = vld [vmem:[#allocation2 + $0x4d8] sm:$0xff]  ;;  %v3975_v47 = vpack.c.bf16 %v171_v41, %v163_v39  ;;  %v177_v49 = vld [vmem:[#allocation2 + $0x480] sm:$0xff] }
  0x2c   :  { %3964 = vmatpush1.bf16.msra.mxu1 %v3963_v11  ;;  %3902 = vmatprep.subr.bf16.mxu0 %v3901_v12  ;;  %v3913_v48 = vpack.c.bf16 %v186_v43, %v178_v42  ;;  %v185_v50 = vld [vmem:[#allocation2 + $0x4c0] sm:$0xff]  ;;  %v179_v51 = vld [vmem:[#allocation2 + $0x490] sm:$0xff]  ;;  %v3977_v52 = vpack.c.bf16 %v188_v45, %v180_v44  ;;  %v194_v54 = vld [vmem:[#allocation2 + $0x508] sm:$0xff] }
  0x2d   :  { %3966 = vmatprep.subr.bf16.mxu1 %v3965_v16  ;;  %v187_v53 = vld [vmem:[#allocation2 + $0x4d0] sm:$0xff]  ;;  %v202_v55 = vld [vmem:[#allocation2 + $0x548] sm:$0xff]  ;;  %v196_v56 = vld [vmem:[#allocation2 + $0x518] sm:$0xff]  ;;  %v3915_v58 = vpack.c.bf16 %v185_v50, %v177_v49 }
  0x2e   :  { %v204_v57 = vld [vmem:[#allocation2 + $0x558] sm:$0xff]  ;;  %v3979_v59 = vpack.c.bf16 %v187_v53, %v179_v51  ;;  %v3917_v60 = vpack.c.bf16 %v202_v55, %v194_v54  ;;  %v193_v61 = vld [vmem:[#allocation2 + $0x500] sm:$0xff]  ;;  %v195_v63 = vld [vmem:[#allocation2 + $0x510] sm:$0xff] }
  0x2f   :  { %3904 = vmatpush1.bf16.msra.mxu0 %v3903_v22  ;;  %v201_v62 = vld [vmem:[#allocation2 + $0x540] sm:$0xff]  ;;  %v3981_v0 = vpack.c.bf16 %v204_v57, %v196_v56  ;;  %v203_v1 = vld [vmem:[#allocation2 + $0x550] sm:$0xff]  ;;  %v210_v2 = vld [vmem:[#allocation2 + $0x588] sm:$0xff] }
  0x30   :  { %3968 = vmatpush1.bf16.msra.mxu1 %v3967_v23  ;;  %3906 = vmatprep.subr.bf16.mxu0 %v3905_v24  ;;  %v218_v3 = vld [vmem:[#allocation2 + $0x5c8] sm:$0xff]  ;;  %v212_v4 = vld [vmem:[#allocation2 + $0x598] sm:$0xff]  ;;  %v3919_v6 = vpack.c.bf16 %v201_v62, %v193_v61  ;;  %v209_v7 = vld [vmem:[#allocation2 + $0x580] sm:$0xff]  ;;  %v3983_v8 = vpack.c.bf16 %v203_v1, %v195_v63 }
  0x31   :  { %3970 = vmatprep.subr.bf16.mxu1 %v3969_v28  ;;  %v220_v5 = vld [vmem:[#allocation2 + $0x5d8] sm:$0xff]  ;;  %v3921_v9 = vpack.c.bf16 %v218_v3, %v210_v2  ;;  %v217_v10 = vld [vmem:[#allocation2 + $0x5c0] sm:$0xff]  ;;  %v211_v11 = vld [vmem:[#allocation2 + $0x590] sm:$0xff] }
  0x32   :  { %v219_v12 = vld [vmem:[#allocation2 + $0x5d0] sm:$0xff]  ;;  %v3985_v13 = vpack.c.bf16 %v220_v5, %v212_v4  ;;  %v226_v14 = vld [vmem:[#allocation2 + $0x608] sm:$0xff]  ;;  %v228_v17 = vld [vmem:[#allocation2 + $0x618] sm:$0xff]  ;;  %v3923_v19 = vpack.c.bf16 %v217_v10, %v209_v7 }
  0x33   :  { %3908 = vmatpush1.bf16.msra.mxu0 %v3907_v34  ;;  %v234_v15 = vld [vmem:[#allocation2 + $0x648] sm:$0xff]  ;;  %v236_v18 = vld [vmem:[#allocation2 + $0x658] sm:$0xff]  ;;  %v3987_v20 = vpack.c.bf16 %v219_v12, %v211_v11  ;;  %v225_v22 = vld [vmem:[#allocation2 + $0x600] sm:$0xff] }
  0x34   :  { %3972 = vmatpush1.bf16.msra.mxu1 %v3971_v35  ;;  %3910 = vmatprep.subr.bf16.mxu0 %v3909_v36  ;;  %v4352_v16 = vld [vmem:[%s4869_s0 + $0x8] sm:$0xff]  ;;  %v3925_v21 = vpack.c.bf16 %v234_v15, %v226_v14  ;;  %v233_v23 = vld [vmem:[#allocation2 + $0x640] sm:$0xff]  ;;  %v227_v24 = vld [vmem:[#allocation2 + $0x610] sm:$0xff]  ;;  %v3989_v25 = vpack.c.bf16 %v236_v18, %v228_v17 }
  0x35   :  { %3974 = vmatprep.subr.bf16.mxu1 %v3973_v40  ;;  %353 = vmatprep.mubr.f32.mxu0 %v4352_v16  ;;  %v235_v26 = vld [vmem:[#allocation2 + $0x650] sm:$0xff]  ;;  %v242_v27 = vld [vmem:[#allocation2 + $0x688] sm:$0xff]  ;;  %v244_v29 = vld [vmem:[#allocation2 + $0x698] sm:$0xff]  ;;  %v3927_v31 = vpack.c.bf16 %v233_v23, %v225_v22 }
  0x36   :  { %424 = vmatprep.mubr.f32.mxu1 %v4352_v16  ;;  %v250_v28 = vld [vmem:[#allocation2 + $0x6c8] sm:$0xff]  ;;  %v252_v30 = vld [vmem:[#allocation2 + $0x6d8] sm:$0xff]  ;;  %v3991_v32 = vpack.c.bf16 %v235_v26, %v227_v24  ;;  %v241_v34 = vld [vmem:[#allocation2 + $0x680] sm:$0xff] }
  0x37   :  { %3912 = vmatpush1.bf16.msra.mxu0 %v3911_v46  ;;  %v3929_v33 = vpack.c.bf16 %v250_v28, %v242_v27  ;;  %v249_v35 = vld [vmem:[#allocation2 + $0x6c0] sm:$0xff]  ;;  %v243_v36 = vld [vmem:[#allocation2 + $0x690] sm:$0xff]  ;;  %v3993_v37 = vpack.c.bf16 %v252_v30, %v244_v29  ;;  %v258_v39 = vld [vmem:[#allocation2 + $0x708] sm:$0xff] }
  0x38   :  { %3976 = vmatpush1.bf16.msra.mxu1 %v3975_v47  ;;  %3914 = vmatprep.subr.bf16.mxu0 %v3913_v48  ;;  %v251_v38 = vld [vmem:[#allocation2 + $0x6d0] sm:$0xff]  ;;  %v266_v40 = vld [vmem:[#allocation2 + $0x748] sm:$0xff]  ;;  %v260_v41 = vld [vmem:[#allocation2 + $0x718] sm:$0xff]  ;;  %v3931_v43 = vpack.c.bf16 %v249_v35, %v241_v34 }
  0x39   :  { %3978 = vmatprep.subr.bf16.mxu1 %v3977_v52  ;;  %v268_v42 = vld [vmem:[#allocation2 + $0x758] sm:$0xff]  ;;  %v3995_v44 = vpack.c.bf16 %v251_v38, %v243_v36  ;;  %v3933_v45 = vpack.c.bf16 %v266_v40, %v258_v39  ;;  %v257_v46 = vld [vmem:[#allocation2 + $0x700] sm:$0xff]  ;;  %v259_v48 = vld [vmem:[#allocation2 + $0x710] sm:$0xff] }
  0x3a   :  { %v265_v47 = vld [vmem:[#allocation2 + $0x740] sm:$0xff]  ;;  %v3997_v49 = vpack.c.bf16 %v268_v42, %v260_v41  ;;  %v267_v50 = vld [vmem:[#allocation2 + $0x750] sm:$0xff]  ;;  %v274_v51 = vld [vmem:[#allocation2 + $0x788] sm:$0xff] }
  0x3b   :  { %3916 = vmatpush1.bf16.msra.mxu0 %v3915_v58  ;;  %v282_v52 = vld [vmem:[#allocation2 + $0x7c8] sm:$0xff]  ;;  %v276_v53 = vld [vmem:[#allocation2 + $0x798] sm:$0xff]  ;;  %v3935_v55 = vpack.c.bf16 %v265_v47, %v257_v46  ;;  %v3999_v56 = vpack.c.bf16 %v267_v50, %v259_v48  ;;  %v273_v58 = vld [vmem:[#allocation2 + $0x780] sm:$0xff] }
  0x3c   :  { %3980 = vmatpush1.bf16.msra.mxu1 %v3979_v59  ;;  %3918 = vmatprep.subr.bf16.mxu0 %v3917_v60  ;;  %v284_v54 = vld [vmem:[#allocation2 + $0x7d8] sm:$0xff]  ;;  %v3937_v57 = vpack.c.bf16 %v282_v52, %v274_v51  ;;  %v281_v59 = vld [vmem:[#allocation2 + $0x7c0] sm:$0xff]  ;;  %v275_v60 = vld [vmem:[#allocation2 + $0x790] sm:$0xff] }
  0x3d   :  { %3982 = vmatprep.subr.bf16.mxu1 %v3981_v0  ;;  %v4001_v61 = vpack.c.bf16 %v284_v54, %v276_v53  ;;  %v283_v62 = vld [vmem:[#allocation2 + $0x7d0] sm:$0xff]  ;;  %v38_v63 = vld [vmem:[#allocation2 + $0x28] sm:$0xff]  ;;  %v40_v1 = vld [vmem:[#allocation2 + $0x38] sm:$0xff]  ;;  %v3939_v3 = vpack.c.bf16 %v281_v59, %v273_v58 }
  0x3e   :  { %v46_v0 = vld [vmem:[#allocation2 + $0x68] sm:$0xff]  ;;  %v48_v2 = vld [vmem:[#allocation2 + $0x78] sm:$0xff]  ;;  %v4003_v4 = vpack.c.bf16 %v283_v62, %v275_v60  ;;  %v45_v7 = vld [vmem:[#allocation2 + $0x60] sm:$0xff] }
  0x3f   :  { %3920 = vmatpush1.bf16.msra.mxu0 %v3919_v6  ;;  %v4005_v5 = vpack.c.bf16 %v46_v0, %v38_v63  ;;  %v37_v6 = vld [vmem:[#allocation2 + $0x20] sm:$0xff]  ;;  %v47_v10 = vld [vmem:[#allocation2 + $0x70] sm:$0xff]  ;;  %v54_v11 = vld [vmem:[#allocation2 + $0xa8] sm:$0xff] }
  0x40   :  { %3984 = vmatpush1.bf16.msra.mxu1 %v3983_v8  ;;  %3922 = vmatprep.subr.bf16.mxu0 %v3921_v9  ;;  %v39_v8 = vld [vmem:[#allocation2 + $0x30] sm:$0xff]  ;;  %v4069_v9 = vpack.c.bf16 %v48_v2, %v40_v1  ;;  %v62_v12 = vld [vmem:[#allocation2 + $0xe8] sm:$0xff]  ;;  %v64_v14 = vld [vmem:[#allocation2 + $0xf8] sm:$0xff]  ;;  %v4007_v17 = vpack.c.bf16 %v45_v7, %v37_v6 }
  0x41   :  { %3986 = vmatprep.subr.bf16.mxu1 %v3985_v13  ;;  %v56_v13 = vld [vmem:[#allocation2 + $0xb8] sm:$0xff]  ;;  %v4359_v15 = vld [vmem:[%s4869_s0] sm:$0xff]  ;;  %v4071_v18 = vpack.c.bf16 %v47_v10, %v39_v8  ;;  %v55_v22 = vld [vmem:[#allocation2 + $0xb0] sm:$0xff]  ;;  %s4302_s0 = smov 127  }
  0x42   :  { %v4073_v23 = vpack.c.bf16 %v64_v14, %v56_v13  ;;  %v63_v24 = vld [vmem:[#allocation2 + $0xf0] sm:$0xff]  ;;  %v78_v26 = vld [vmem:[#allocation2 + $0x168] sm:$0xff]  ;;  %v72_v27 = vld [vmem:[#allocation2 + $0x138] sm:$0xff] }
  0x43   :  { %3924 = vmatpush1.bf16.msra.mxu0 %v3923_v19  ;;  %v4009_v19 = vpack.c.bf16 %v62_v12, %v54_v11  ;;  %v80_v28 = vld [vmem:[#allocation2 + $0x178] sm:$0xff]  ;;  %v4075_v30 = vpack.c.bf16 %v63_v24, %v55_v22  ;;  %v71_v34 = vld [vmem:[#allocation2 + $0x130] sm:$0xff]  ;;  %v94_v38 = vld [vmem:[#allocation2 + $0x1e8] sm:$0xff] }
  0x44   :  { %3988 = vmatpush1.bf16.msra.mxu1 %v3987_v20  ;;  %3926 = vmatprep.subr.bf16.mxu0 %v3925_v21  ;;  %v53_v20 = vld [vmem:[#allocation2 + $0xa0] sm:$0xff]  ;;  %v4077_v35 = vpack.c.bf16 %v80_v28, %v72_v27  ;;  %v79_v36 = vld [vmem:[#allocation2 + $0x170] sm:$0xff]  ;;  %v88_v39 = vld [vmem:[#allocation2 + $0x1b8] sm:$0xff] }
  0x45   :  { %3990 = vmatprep.subr.bf16.mxu1 %v3989_v25  ;;  %v61_v21 = vld [vmem:[#allocation2 + $0xe0] sm:$0xff]  ;;  %v70_v25 = vld [vmem:[#allocation2 + $0x128] sm:$0xff]  ;;  %v96_v40 = vld [vmem:[#allocation2 + $0x1f8] sm:$0xff]  ;;  %v4079_v42 = vpack.c.bf16 %v79_v36, %v71_v34 }
  0x46   :  { %v4011_v29 = vpack.c.bf16 %v61_v21, %v53_v20  ;;  %v87_v46 = vld [vmem:[#allocation2 + $0x1b0] sm:$0xff]  ;;  %v4081_v47 = vpack.c.bf16 %v96_v40, %v88_v39  ;;  %v110_v50 = vld [vmem:[#allocation2 + $0x268] sm:$0xff]  ;;  %v104_v51 = vld [vmem:[#allocation2 + $0x238] sm:$0xff] }
  0x47   :  { %3928 = vmatpush1.bf16.msra.mxu0 %v3927_v31  ;;  %v4013_v31 = vpack.c.bf16 %v78_v26, %v70_v25  ;;  %v95_v48 = vld [vmem:[#allocation2 + $0x1f0] sm:$0xff]  ;;  %v112_v52 = vld [vmem:[#allocation2 + $0x278] sm:$0xff]  ;;  %v118_v60 = vld [vmem:[#allocation2 + $0x2a8] sm:$0xff] }
  0x48   :  { %3992 = vmatpush1.bf16.msra.mxu1 %v3991_v32  ;;  %3930 = vmatprep.subr.bf16.mxu0 %v3929_v33  ;;  %v69_v32 = vld [vmem:[#allocation2 + $0x120] sm:$0xff]  ;;  %v4085_v58 = vpack.c.bf16 %v112_v52, %v104_v51  ;;  %v111_v59 = vld [vmem:[#allocation2 + $0x270] sm:$0xff]  ;;  %v120_v62 = vld [vmem:[#allocation2 + $0x2b8] sm:$0xff] }
  0x49   :  { %3994 = vmatprep.subr.bf16.mxu1 %v3993_v37  ;;  %v77_v33 = vld [vmem:[#allocation2 + $0x160] sm:$0xff]  ;;  %v86_v37 = vld [vmem:[#allocation2 + $0x1a8] sm:$0xff]  ;;  %v128_v63 = vld [vmem:[#allocation2 + $0x2f8] sm:$0xff] }
  0x4a   :  { %v4015_v41 = vpack.c.bf16 %v77_v33, %v69_v32  ;;  %v4089_v6 = vpack.c.bf16 %v128_v63, %v120_v62  ;;  %v127_v7 = vld [vmem:[#allocation2 + $0x2f0] sm:$0xff]  ;;  %v134_v8 = vld [vmem:[#allocation2 + $0x328] sm:$0xff]  ;;  %v136_v10 = vld [vmem:[#allocation2 + $0x338] sm:$0xff] }
  0x4b   :  { %3932 = vmatpush1.bf16.msra.mxu0 %v3931_v43  ;;  %v4017_v43 = vpack.c.bf16 %v94_v38, %v86_v37  ;;  %v144_v11 = vld [vmem:[#allocation2 + $0x378] sm:$0xff]  ;;  %v143_v21 = vld [vmem:[#allocation2 + $0x370] sm:$0xff]  ;;  %v150_v22 = vld [vmem:[#allocation2 + $0x3a8] sm:$0xff] }
  0x4c   :  { %3996 = vmatpush1.bf16.msra.mxu1 %v3995_v44  ;;  %3934 = vmatprep.subr.bf16.mxu0 %v3933_v45  ;;  %v85_v44 = vld [vmem:[#allocation2 + $0x1a0] sm:$0xff]  ;;  %v4093_v20 = vpack.c.bf16 %v144_v11, %v136_v10  ;;  %v152_v24 = vld [vmem:[#allocation2 + $0x3b8] sm:$0xff]  ;;  %v159_v33 = vld [vmem:[#allocation2 + $0x3f0] sm:$0xff] }
  0x4d   :  { %3998 = vmatprep.subr.bf16.mxu1 %v3997_v49  ;;  %v93_v45 = vld [vmem:[#allocation2 + $0x1e0] sm:$0xff]  ;;  %v102_v49 = vld [vmem:[#allocation2 + $0x228] sm:$0xff]  ;;  %v160_v25 = vld [vmem:[#allocation2 + $0x3f8] sm:$0xff] }
  0x4e   :  { %v4019_v53 = vpack.c.bf16 %v93_v45, %v85_v44  ;;  %v4021_v54 = vpack.c.bf16 %v110_v50, %v102_v49  ;;  %v4097_v32 = vpack.c.bf16 %v160_v25, %v152_v24  ;;  %v166_v34 = vld [vmem:[#allocation2 + $0x428] sm:$0xff]  ;;  %v168_v36 = vld [vmem:[#allocation2 + $0x438] sm:$0xff]  ;;  %v175_v45 = vld [vmem:[#allocation2 + $0x470] sm:$0xff] }
  0x4f   :  { %3936 = vmatpush1.bf16.msra.mxu0 %v3935_v55  ;;  %v101_v55 = vld [vmem:[#allocation2 + $0x220] sm:$0xff]  ;;  %v176_v37 = vld [vmem:[#allocation2 + $0x478] sm:$0xff] }
  0x50   :  { %4000 = vmatpush1.bf16.msra.mxu1 %v3999_v56  ;;  %3938 = vmatprep.subr.bf16.mxu0 %v3937_v57  ;;  %v109_v56 = vld [vmem:[#allocation2 + $0x260] sm:$0xff]  ;;  %v103_v57 = vld [vmem:[#allocation2 + $0x230] sm:$0xff]  ;;  %v4101_v44 = vpack.c.bf16 %v176_v37, %v168_v36  ;;  %v192_v49 = vld [vmem:[#allocation2 + $0x4f8] sm:$0xff] }
  0x51   :  { %4002 = vmatprep.subr.bf16.mxu1 %v4001_v61  ;;  %v126_v61 = vld [vmem:[#allocation2 + $0x2e8] sm:$0xff]  ;;  %v4023_v0 = vpack.c.bf16 %v109_v56, %v101_v55  ;;  %v4087_v1 = vpack.c.bf16 %v111_v59, %v103_v57  ;;  %v191_v56 = vld [vmem:[#allocation2 + $0x4f0] sm:$0xff]  ;;  %v200_v59 = vld [vmem:[#allocation2 + $0x538] sm:$0xff] }
  0x52   :  { %v4025_v2 = vpack.c.bf16 %v126_v61, %v118_v60  ;;  %v198_v57 = vld [vmem:[#allocation2 + $0x528] sm:$0xff]  ;;  %v208_v60 = vld [vmem:[#allocation2 + $0x578] sm:$0xff] }
  0x53   :  { %3940 = vmatpush1.bf16.msra.mxu0 %v3939_v3  ;;  %v117_v3 = vld [vmem:[#allocation2 + $0x2a0] sm:$0xff] }
  0x54   :  { %4004 = vmatpush1.bf16.msra.mxu1 %v4003_v4  ;;  %4006 = vmatprep.subr.bf16.mxu0 %v4005_v5  ;;  %v125_v4 = vld [vmem:[#allocation2 + $0x2e0] sm:$0xff]  ;;  %v119_v5 = vld [vmem:[#allocation2 + $0x2b0] sm:$0xff] }
  0x55   :  { %4070 = vmatprep.subr.bf16.mxu1 %v4069_v9  ;;  %v142_v9 = vld [vmem:[#allocation2 + $0x368] sm:$0xff]  ;;  %v4027_v12 = vpack.c.bf16 %v125_v4, %v117_v3  ;;  %v4091_v13 = vpack.c.bf16 %v127_v7, %v119_v5  ;;  %v4109_v3 = vpack.c.bf16 %v208_v60, %v200_v59  ;;  %v207_v4 = vld [vmem:[#allocation2 + $0x570] sm:$0xff]  ;;  %v216_v7 = vld [vmem:[#allocation2 + $0x5b8] sm:$0xff] }
  0x56   :  { %354 = vmatmul.mubr.f32.vlgmr.msra.gmra.mrb[0].mxu0 %v4359_v15  ;;  %v4029_v14 = vpack.c.bf16 %v142_v9, %v134_v8  ;;  %v214_v5 = vld [vmem:[#allocation2 + $0x5a8] sm:$0xff]  ;;  %v224_v8 = vld [vmem:[#allocation2 + $0x5f8] sm:$0xff] }
  0x57   :  { %425 = vmatmul.mubr.f32.vlgmr.msra.gmra.mrb[0].mxu1 %v4359_v15  ;;  %4008 = vmatpush1.bf16.msra.mxu0 %v4007_v17  ;;  %v133_v17 = vld [vmem:[#allocation2 + $0x320] sm:$0xff] }
  0x58   :  { %4072 = vmatpush1.bf16.msra.mxu1 %v4071_v18  ;;  %4010 = vmatprep.subr.bf16.mxu0 %v4009_v19  ;;  %v141_v18 = vld [vmem:[#allocation2 + $0x360] sm:$0xff]  ;;  %v135_v19 = vld [vmem:[#allocation2 + $0x330] sm:$0xff] }
  0x59   :  { %4074 = vmatprep.subr.bf16.mxu1 %v4073_v23  ;;  %495 = vmatprep.mubr.f32.mxu0 %v4352_v16  ;;  %v158_v23 = vld [vmem:[#allocation2 + $0x3e8] sm:$0xff]  ;;  %v4031_v26 = vpack.c.bf16 %v141_v18, %v133_v17  ;;  %v4095_v27 = vpack.c.bf16 %v143_v21, %v135_v19  ;;  %v4113_v17 = vpack.c.bf16 %v224_v8, %v216_v7  ;;  %v223_v18 = vld [vmem:[#allocation2 + $0x5f0] sm:$0xff]  ;;  %v232_v21 = vld [vmem:[#allocation2 + $0x638] sm:$0xff]  ;;  %v4303_v8 = vmov 0.0  }
  0x5a   :  { %566 = vmatprep.mubr.f32.mxu1 %v4352_v16  ;;  %v4083_v16 = vpack.c.bf16 %v95_v48, %v87_v46  ;;  %v4033_v28 = vpack.c.bf16 %v158_v23, %v150_v22  ;;  %v182_v46 = vld [vmem:[#allocation2 + $0x4a8] sm:$0xff]  ;;  %v184_v48 = vld [vmem:[#allocation2 + $0x4b8] sm:$0xff] }
  0x5b   :  { %4012 = vmatpush1.bf16.msra.mxu0 %v4011_v29  ;;  %v149_v29 = vld [vmem:[#allocation2 + $0x3a0] sm:$0xff]  ;;  %v4105_v55 = vpack.c.bf16 %v192_v49, %v184_v48  ;;  %v230_v19 = vld [vmem:[#allocation2 + $0x628] sm:$0xff]  ;;  %v240_v22 = vld [vmem:[#allocation2 + $0x678] sm:$0xff] }
  0x5c   :  { %4076 = vmatpush1.bf16.msra.mxu1 %v4075_v30  ;;  %4014 = vmatprep.subr.bf16.mxu0 %v4013_v31  ;;  %v157_v30 = vld [vmem:[#allocation2 + $0x3e0] sm:$0xff]  ;;  %v151_v31 = vld [vmem:[#allocation2 + $0x3b0] sm:$0xff] }
  0x5d   :  { %4078 = vmatprep.subr.bf16.mxu1 %v4077_v35  ;;  %v174_v35 = vld [vmem:[#allocation2 + $0x468] sm:$0xff]  ;;  %v4035_v38 = vpack.c.bf16 %v157_v30, %v149_v29  ;;  %v4099_v39 = vpack.c.bf16 %v159_v33, %v151_v31  ;;  %v4117_v29 = vpack.c.bf16 %v240_v22, %v232_v21  ;;  %v239_v30 = vld [vmem:[#allocation2 + $0x670] sm:$0xff]  ;;  %v248_v33 = vld [vmem:[#allocation2 + $0x6b8] sm:$0xff] }
  0x5e   :  { %v4037_v40 = vpack.c.bf16 %v174_v35, %v166_v34  ;;  %v246_v31 = vld [vmem:[#allocation2 + $0x6a8] sm:$0xff]  ;;  %v256_v34 = vld [vmem:[#allocation2 + $0x6f8] sm:$0xff] }
  0x5f   :  { %4016 = vmatpush1.bf16.msra.mxu0 %v4015_v41  ;;  %v165_v41 = vld [vmem:[#allocation2 + $0x420] sm:$0xff]  ;;  %v4442_v22 = vld [vmem:[%s4871_s2 + $0x18] sm:$0xff] }
  0x60   :  { %4080 = vmatpush1.bf16.msra.mxu1 %v4079_v42  ;;  %4018 = vmatprep.subr.bf16.mxu0 %v4017_v43  ;;  %v173_v42 = vld [vmem:[#allocation2 + $0x460] sm:$0xff]  ;;  %v167_v43 = vld [vmem:[#allocation2 + $0x430] sm:$0xff] }
  0x61   :  { %4082 = vmatprep.subr.bf16.mxu1 %v4081_v47  ;;  %v190_v47 = vld [vmem:[#allocation2 + $0x4e8] sm:$0xff]  ;;  %v4039_v50 = vpack.c.bf16 %v173_v42, %v165_v41  ;;  %v4103_v51 = vpack.c.bf16 %v175_v45, %v167_v43  ;;  %v4121_v41 = vpack.c.bf16 %v256_v34, %v248_v33  ;;  %v255_v42 = vld [vmem:[#allocation2 + $0x6f0] sm:$0xff]  ;;  %v264_v45 = vld [vmem:[#allocation2 + $0x738] sm:$0xff] }
  0x62   :  { %v4041_v52 = vpack.c.bf16 %v190_v47, %v182_v46  ;;  %v262_v43 = vld [vmem:[#allocation2 + $0x728] sm:$0xff]  ;;  %v272_v46 = vld [vmem:[#allocation2 + $0x778] sm:$0xff] }
  0x63   :  { %4020 = vmatpush1.bf16.msra.mxu0 %v4019_v53  ;;  %v181_v53 = vld [vmem:[#allocation2 + $0x4a0] sm:$0xff] }
  0x64   :  { %4084 = vmatpush1.bf16.msra.mxu1 %v4083_v16  ;;  %4022 = vmatprep.subr.bf16.mxu0 %v4021_v54  ;;  %v189_v16 = vld [vmem:[#allocation2 + $0x4e0] sm:$0xff]  ;;  %v183_v54 = vld [vmem:[#allocation2 + $0x4b0] sm:$0xff] }
  0x65   :  { %4086 = vmatprep.subr.bf16.mxu1 %v4085_v58  ;;  %v206_v58 = vld [vmem:[#allocation2 + $0x568] sm:$0xff]  ;;  %v4043_v61 = vpack.c.bf16 %v189_v16, %v181_v53  ;;  %v4107_v62 = vpack.c.bf16 %v191_v56, %v183_v54  ;;  %v4125_v53 = vpack.c.bf16 %v272_v46, %v264_v45  ;;  %v271_v16 = vld [vmem:[#allocation2 + $0x770] sm:$0xff]  ;;  %v280_v56 = vld [vmem:[#allocation2 + $0x7b8] sm:$0xff] }
  0x66   :  { %v4045_v63 = vpack.c.bf16 %v206_v58, %v198_v57  ;;  %v278_v54 = vld [vmem:[#allocation2 + $0x7a8] sm:$0xff]  ;;  %v288_v57 = vld [vmem:[#allocation2 + $0x7f8] sm:$0xff] }
  0x67   :  { %4024 = vmatpush1.bf16.msra.mxu0 %v4023_v0  ;;  %v197_v0 = vld [vmem:[#allocation2 + $0x520] sm:$0xff] }
  0x68   :  { %4088 = vmatpush1.bf16.msra.mxu1 %v4087_v1  ;;  %4026 = vmatprep.subr.bf16.mxu0 %v4025_v2  ;;  %v205_v1 = vld [vmem:[#allocation2 + $0x560] sm:$0xff]  ;;  %v199_v2 = vld [vmem:[#allocation2 + $0x530] sm:$0xff] }
  0x69   :  { %4090 = vmatprep.subr.bf16.mxu1 %v4089_v6  ;;  %v222_v6 = vld [vmem:[#allocation2 + $0x5e8] sm:$0xff]  ;;  %v4047_v9 = vpack.c.bf16 %v205_v1, %v197_v0  ;;  %v4111_v10 = vpack.c.bf16 %v207_v4, %v199_v2  ;;  %v279_v0 = vld [vmem:[#allocation2 + $0x7b0] sm:$0xff] }
  0x6a   :  { %v4049_v11 = vpack.c.bf16 %v222_v6, %v214_v5  ;;  %v287_v1 = vld [vmem:[#allocation2 + $0x7f0] sm:$0xff] }
  0x6b   :  { %4028 = vmatpush1.bf16.msra.mxu0 %v4027_v12  ;;  %v213_v12 = vld [vmem:[#allocation2 + $0x5a0] sm:$0xff] }
  0x6c   :  { %4092 = vmatpush1.bf16.msra.mxu1 %v4091_v13  ;;  %4030 = vmatprep.subr.bf16.mxu0 %v4029_v14  ;;  %v221_v13 = vld [vmem:[#allocation2 + $0x5e0] sm:$0xff]  ;;  %v215_v14 = vld [vmem:[#allocation2 + $0x5b0] sm:$0xff] }
  0x6d   :  { %4094 = vmatprep.subr.bf16.mxu1 %v4093_v20  ;;  %v238_v20 = vld [vmem:[#allocation2 + $0x668] sm:$0xff]  ;;  %v4051_v23 = vpack.c.bf16 %v221_v13, %v213_v12  ;;  %v4115_v24 = vpack.c.bf16 %v223_v18, %v215_v14  ;;  %v591_v12 = vlaneseq }
  0x6e   :  { %v4053_v25 = vpack.c.bf16 %v238_v20, %v230_v19  ;;  %v4429_v20 = vld [vmem:[%s4871_s2 + $0x10] sm:$0xff] }
  0x6f   :  { %4032 = vmatpush1.bf16.msra.mxu0 %v4031_v26  ;;  %v229_v26 = vld [vmem:[#allocation2 + $0x620] sm:$0xff]  ;;  %v4415_v13 = vand.u32 127, %v591_v12 }
  0x70   :  { %4096 = vmatpush1.bf16.msra.mxu1 %v4095_v27  ;;  %4034 = vmatprep.subr.bf16.mxu0 %v4033_v28  ;;  %v237_v27 = vld [vmem:[#allocation2 + $0x660] sm:$0xff]  ;;  %v231_v28 = vld [vmem:[#allocation2 + $0x630] sm:$0xff] }
  0x71   :  { %4098 = vmatprep.subr.bf16.mxu1 %v4097_v32  ;;  %v254_v32 = vld [vmem:[#allocation2 + $0x6e8] sm:$0xff]  ;;  %v4055_v35 = vpack.c.bf16 %v237_v27, %v229_v26  ;;  %v4119_v36 = vpack.c.bf16 %v239_v30, %v231_v28  ;;  %vm593_vm0 = vcmp.lt.s32.totalorder %v4415_v13, 127  ;;  %vm1250_vm2 = vcmp.lt.s32.totalorder %v4415_v13, 126 }
  0x72   :  { %v4057_v37 = vpack.c.bf16 %v254_v32, %v246_v31  ;;  %vm1608_vm3 = vcmp.lt.s32.totalorder %v4415_v13, 96  ;;  %vm1966_vm4 = vcmp.lt.s32.totalorder %v4415_v13, 95  ;;  %vm2324_vm5 = vcmp.lt.s32.totalorder %v4415_v13, 94 }
  0x73   :  { %4036 = vmatpush1.bf16.msra.mxu0 %v4035_v38  ;;  %v245_v38 = vld [vmem:[#allocation2 + $0x6a0] sm:$0xff]  ;;  %vm2682_vm6 = vcmp.lt.s32.totalorder %v4415_v13, 64  ;;  %vm3040_vm7 = vcmp.lt.s32.totalorder %v4415_v13, 63  ;;  %vm3398_vm8 = vcmp.lt.s32.totalorder %v4415_v13, 62 }
  0x74   :  { %4100 = vmatpush1.bf16.msra.mxu1 %v4099_v39  ;;  %4038 = vmatprep.subr.bf16.mxu0 %v4037_v40  ;;  %v253_v39 = vld [vmem:[#allocation2 + $0x6e0] sm:$0xff]  ;;  %v247_v40 = vld [vmem:[#allocation2 + $0x6b0] sm:$0xff] }
  0x75   :  { %4102 = vmatprep.subr.bf16.mxu1 %v4101_v44  ;;  %v270_v44 = vld [vmem:[#allocation2 + $0x768] sm:$0xff]  ;;  %v4059_v47 = vpack.c.bf16 %v253_v39, %v245_v38  ;;  %v4123_v48 = vpack.c.bf16 %v255_v42, %v247_v40  ;;  %v573_v38 = vld [vmem:[%s4871_s2] sm:$0xff] }
  0x76   :  { %v4061_v49 = vpack.c.bf16 %v270_v44, %v262_v43  ;;  %v574_v42 = vld [vmem:[%s4871_s2 + $0x8] sm:$0xff]  ;;  %v3740_v43 = vld [vmem:[%s4872_s3] sm:$0xff]  ;;  %v4310_v44 = vmov 0  }
  0x77   :  { %4040 = vmatpush1.bf16.msra.mxu0 %v4039_v50  ;;  %v261_v50 = vld [vmem:[#allocation2 + $0x720] sm:$0xff]  ;;  %4273 = vset.pattern.permute.xlu0 %v4310_v44 }
  0x78   :  { %4104 = vmatpush1.bf16.msra.mxu1 %v4103_v51  ;;  %4042 = vmatprep.subr.bf16.mxu0 %v4041_v52  ;;  %v269_v51 = vld [vmem:[#allocation2 + $0x760] sm:$0xff]  ;;  %v263_v52 = vld [vmem:[#allocation2 + $0x730] sm:$0xff] }
  0x79   :  { %4106 = vmatprep.subr.bf16.mxu1 %v4105_v55  ;;  %v286_v55 = vld [vmem:[#allocation2 + $0x7e8] sm:$0xff]  ;;  %v4063_v58 = vpack.c.bf16 %v269_v51, %v261_v50  ;;  %v4127_v59 = vpack.c.bf16 %v271_v16, %v263_v52  ;;  %4274 = vset.pattern.permute.xlu1 %v4310_v44 }
  0x7a   :  { %v4065_v60 = vpack.c.bf16 %v286_v55, %v278_v54  ;;  %v3807_v55 = vld [vmem:[%s4871_s2 + $0x20] sm:$0xff] }
  0x7b   :  { %4044 = vmatpush1.bf16.msra.mxu0 %v4043_v61  ;;  %v277_v61 = vld [vmem:[#allocation2 + $0x7a0] sm:$0xff] }
  0x7c   :  { %4108 = vmatpush1.bf16.msra.mxu1 %v4107_v62  ;;  %4046 = vmatprep.subr.bf16.mxu0 %v4045_v63  ;;  %v285_v62 = vld [vmem:[#allocation2 + $0x7e0] sm:$0xff]  ;;  %v4129_v63 = vpack.c.bf16 %v288_v57, %v280_v56 }
  0x7d   :  { %4110 = vmatprep.subr.bf16.mxu1 %v4109_v3  ;;  %v4067_v2 = vpack.c.bf16 %v285_v62, %v277_v61  ;;  %v4131_v3 = vpack.c.bf16 %v287_v1, %v279_v0  ;;  %v3808_v61 = vld [vmem:[%s4871_s2 + $0x28] sm:$0xff] }
  0x7f   :  { %4048 = vmatpush1.bf16.msra.mxu0 %v4047_v9 }
  0x80   :  { %4112 = vmatpush1.bf16.msra.mxu1 %v4111_v10  ;;  %4050 = vmatprep.subr.bf16.mxu0 %v4049_v11 }
  0x81   :  { %4114 = vmatprep.subr.bf16.mxu1 %v4113_v17 }
  0x83   :  { %4052 = vmatpush1.bf16.msra.mxu0 %v4051_v23 }
  0x84   :  { %4116 = vmatpush1.bf16.msra.mxu1 %v4115_v24  ;;  %4054 = vmatprep.subr.bf16.mxu0 %v4053_v25 }
  0x85   :  { %4118 = vmatprep.subr.bf16.mxu1 %v4117_v29 }
  0x87   :  { %4056 = vmatpush1.bf16.msra.mxu0 %v4055_v35 }
  0x88   :  { %4120 = vmatpush1.bf16.msra.mxu1 %v4119_v36  ;;  %4058 = vmatprep.subr.bf16.mxu0 %v4057_v37 }
  0x89   :  { %4122 = vmatprep.subr.bf16.mxu1 %v4121_v41 }
  0x8b   :  { %4060 = vmatpush1.bf16.msra.mxu0 %v4059_v47  ;;  %v3741_v47 = vld [vmem:[%s4872_s3 + $0x8] sm:$0xff] }
  0x8c   :  { %4124 = vmatpush1.bf16.msra.mxu1 %v4123_v48  ;;  %4062 = vmatprep.subr.bf16.mxu0 %v4061_v49 }
  0x8d   :  { %4126 = vmatprep.subr.bf16.mxu1 %v4125_v53 }
  0x8f   :  { %4064 = vmatpush1.bf16.msra.mxu0 %v4063_v58 }
  0x90   :  { %4128 = vmatpush1.bf16.msra.mxu1 %v4127_v59  ;;  %4066 = vmatprep.subr.bf16.mxu0 %v4065_v60 }
  0x91   :  { %4130 = vmatprep.subr.bf16.mxu1 %v4129_v63 }
  0x93   :  { %4068 = vmatpush1.bf16.msra.mxu0 %v4067_v2 }
  0x94   :  { %4132 = vmatpush1.bf16.msra.mxu1 %v4131_v3 }
  0x96   :  { %496 = vmatmul.mubr.f32.vlgmr.msra.gmra.mrb[2].mxu0 %v4359_v15 }
  0x97   :  { %567 = vmatmul.mubr.f32.vlgmr.msra.gmra.mrb[2].mxu1 %v4359_v15  ;;  %676 = vmatprep.mubr.f32.mxu0 %v4303_v8 }
  0x98   :  { %753 = vmatprep.mubr.f32.mxu1 %v4303_v8 }
 0x129   :  { %v4367_v4 = vpop.f32.mrb[0].mxu0 }
 0x12a   :  { %v4369_v5 = vpop.f32.mrb[0].mxu1  ;;  %v4371_v6 = vpop.f32.mrb[1].mxu0 }
 0x12b   :  { %579 = vrot.lane.b32.xlu0 %v4369_v5, %s4302_s0  ;;  %v4374_v7 = vpop.f32.mrb[1].mxu1 }
 0x12c   :  { %581 = vrot.lane.b32.xlu1 %v4374_v7, %s4302_s0 }
 0x12f   :  { %577 = vrot.lane.b32.xlu0 %v4371_v6, %s4302_s0 }
 0x133   :  { %575 = vrot.lane.b32.xlu0 %v4367_v4, %s4302_s0 }
 0x169   :  { %v4381_v15 = vpop.f32.mrb[2].mxu0 }
 0x16a   :  { %v4383_v9 = vpop.f32.mrb[2].mxu1  ;;  %583 = vrot.lane.b32.xlu1 %v4381_v15, %s4302_s0  ;;  %v4386_v10 = vpop.f32.mrb[3].mxu0 }
 0x16b   :  { %587 = vrot.lane.b32.xlu0 %v4383_v9, %s4302_s0  ;;  %v4389_v11 = vpop.f32.mrb[3].mxu1 }
 0x16e   :  { %585 = vrot.lane.b32.xlu1 %v4386_v10, %s4302_s0 }
 0x16f   :  { %1236 = vrot.lane.b32.xlu0 %v4371_v6, %s4304_s6 }
 0x172   :  { %589 = vrot.lane.b32.xlu1 %v4389_v11, %s4302_s0 }
 0x173   :  { %1240 = vrot.lane.b32.xlu0 %v4374_v7, %s4304_s6 }
 0x176   :  { %1238 = vrot.lane.b32.xlu1 %v4369_v5, %s4304_s6 }
 0x177   :  { %1234 = vrot.lane.b32.xlu0 %v4367_v4, %s4304_s6 }
 0x17a   :  { %1242 = vrot.lane.b32.xlu1 %v4381_v15, %s4304_s6 }
 0x17b   :  { %1246 = vrot.lane.b32.xlu0 %v4383_v9, %s4304_s6 }
 0x17e   :  { %1244 = vrot.lane.b32.xlu1 %v4386_v10, %s4304_s6 }
 0x17f   :  { %1594 = vrot.lane.b32.xlu0 %v4371_v6, %s4305_s7 }
 0x182   :  { %1248 = vrot.lane.b32.xlu1 %v4389_v11, %s4304_s6 }
 0x183   :  { %1598 = vrot.lane.b32.xlu0 %v4374_v7, %s4305_s7 }
 0x186   :  { %1596 = vrot.lane.b32.xlu1 %v4369_v5, %s4305_s7 }
 0x187   :  { %1592 = vrot.lane.b32.xlu0 %v4367_v4, %s4305_s7 }
 0x18a   :  { %1600 = vrot.lane.b32.xlu1 %v4381_v15, %s4305_s7 }
 0x18b   :  { %1604 = vrot.lane.b32.xlu0 %v4383_v9, %s4305_s7 }
 0x18e   :  { %1602 = vrot.lane.b32.xlu1 %v4386_v10, %s4305_s7 }
 0x18f   :  { %1952 = vrot.lane.b32.xlu0 %v4371_v6, %s4306_s8 }
 0x192   :  { %1606 = vrot.lane.b32.xlu1 %v4389_v11, %s4305_s7 }
 0x193   :  { %1956 = vrot.lane.b32.xlu0 %v4374_v7, %s4306_s8 }
 0x196   :  { %1954 = vrot.lane.b32.xlu1 %v4369_v5, %s4306_s8 }
 0x197   :  { %1950 = vrot.lane.b32.xlu0 %v4367_v4, %s4306_s8 }
 0x19a   :  { %1958 = vrot.lane.b32.xlu1 %v4381_v15, %s4306_s8 }
 0x19b   :  { %1962 = vrot.lane.b32.xlu0 %v4383_v9, %s4306_s8 }
 0x19d   :  { %v580_v14 = vpop.permute.xlu0 %579 }
 0x19e   :  { %1960 = vrot.lane.b32.xlu1 %v4386_v10, %s4306_s8  ;;  %v582_v23 = vpop.permute.xlu1 %581 }
 0x19f   :  { %2310 = vrot.lane.b32.xlu0 %v4371_v6, %s4307_s9  ;;  %v598_v27 = vsel %vm593_vm0, %v580_v14, %v582_v23 }
 0x1a1   :  { %v578_v17 = vpop.permute.xlu0 %577 }
 0x1a2   :  { %v599_v18 = vsel %vm593_vm0, %v578_v17, %v580_v14  ;;  %1964 = vrot.lane.b32.xlu1 %v4389_v11, %s4306_s8 }
 0x1a3   :  { %2314 = vrot.lane.b32.xlu0 %v4374_v7, %s4307_s9  ;;  %612 = vmatprep.subr.mxu0 %v599_v18  ;;  %v3818_v18 = vld [vmem:[%s4871_s2 + $0x38] sm:$0xff] }
 0x1a5   :  { %v4424_v19 = vpop.permute.xlu0 %575 }
 0x1a6   :  { %v600_v21 = vsel %vm593_vm0, %v4424_v19, %v578_v17  ;;  %2312 = vrot.lane.b32.xlu1 %v4369_v5, %s4307_s9 }
 0x1a7   :  { %2308 = vrot.lane.b32.xlu0 %v4367_v4, %s4307_s9  ;;  %613 = vmatpush1.msra.mxu0 %v600_v21 }
 0x1a8   :  { %3791 = vmatmul.mubr.msk.f32.vlgmr.msra.gmra.mrb[4].mxu0 %vm605_vm1, %v4429_v20 }
 0x1a9   :  { %682 = vmatprep.mubr.f32.mxu0 %v4303_v8 }
 0x1aa   :  { %2316 = vrot.lane.b32.xlu1 %v4381_v15, %s4307_s9 }
 0x1ab   :  { %2320 = vrot.lane.b32.xlu0 %v4383_v9, %s4307_s9 }
 0x1ac   :  { %3792 = vmatmul.mubr.msk.f32.gmra.mrb[6].mxu0 %vm605_vm1, %v4442_v22 }
 0x1ad   :  { %830 = vmatprep.mubr.f32.mxu0 %v4303_v8 }
 0x1ae   :  { %2318 = vrot.lane.b32.xlu1 %v4386_v10, %s4307_s9 }
 0x1af   :  { %2668 = vrot.lane.b32.xlu0 %v4371_v6, %s4301_s26 }
 0x1b2   :  { %2322 = vrot.lane.b32.xlu1 %v4389_v11, %s4307_s9 }
 0x1b3   :  { %2672 = vrot.lane.b32.xlu0 %v4374_v7, %s4301_s26 }
 0x1b6   :  { %2670 = vrot.lane.b32.xlu1 %v4369_v5, %s4301_s26 }
 0x1b7   :  { %2666 = vrot.lane.b32.xlu0 %v4367_v4, %s4301_s26 }
 0x1ba   :  { %2674 = vrot.lane.b32.xlu1 %v4381_v15, %s4301_s26 }
 0x1bb   :  { %2678 = vrot.lane.b32.xlu0 %v4383_v9, %s4301_s26 }
 0x1be   :  { %2676 = vrot.lane.b32.xlu1 %v4386_v10, %s4301_s26 }
 0x1bf   :  { %3026 = vrot.lane.b32.xlu0 %v4371_v6, %s4308_s14 }
 0x1c2   :  { %2680 = vrot.lane.b32.xlu1 %v4389_v11, %s4301_s26 }
 0x1c3   :  { %3030 = vrot.lane.b32.xlu0 %v4374_v7, %s4308_s14 }
 0x1c6   :  { %3028 = vrot.lane.b32.xlu1 %v4369_v5, %s4308_s14 }
 0x1c7   :  { %3024 = vrot.lane.b32.xlu0 %v4367_v4, %s4308_s14 }
 0x1ca   :  { %3032 = vrot.lane.b32.xlu1 %v4381_v15, %s4308_s14 }
 0x1cb   :  { %3036 = vrot.lane.b32.xlu0 %v4383_v9, %s4308_s14 }
 0x1ce   :  { %3034 = vrot.lane.b32.xlu1 %v4386_v10, %s4308_s14 }
 0x1cf   :  { %3384 = vrot.lane.b32.xlu0 %v4371_v6, %s4309_s15 }
 0x1d2   :  { %3038 = vrot.lane.b32.xlu1 %v4389_v11, %s4308_s14 }
 0x1d3   :  { %3388 = vrot.lane.b32.xlu0 %v4374_v7, %s4309_s15 }
 0x1d6   :  { %3386 = vrot.lane.b32.xlu1 %v4369_v5, %s4309_s15 }
 0x1d7   :  { %3382 = vrot.lane.b32.xlu0 %v4367_v4, %s4309_s15 }
 0x1da   :  { %3390 = vrot.lane.b32.xlu1 %v4381_v15, %s4309_s15 }
 0x1db   :  { %3394 = vrot.lane.b32.xlu0 %v4383_v9, %s4309_s15 }
 0x1dc   :  { %v584_v24 = vpop.permute.xlu1 %583 }
 0x1dd   :  { %v588_v25 = vpop.permute.xlu0 %587  ;;  %v597_v26 = vsel %vm593_vm0, %v582_v23, %v584_v24 }
 0x1de   :  { %689 = vmatprep.subr.mxu1 %v597_v26  ;;  %3392 = vrot.lane.b32.xlu1 %v4386_v10, %s4309_s15 }
 0x1df   :  { %690 = vmatpush1.msra.mxu1 %v598_v27  ;;  %3744 = vperm.xlu0 %4273, %v3740_v43  }
 0x1e0   :  { %3793 = vmatmul.mubr.msk.f32.vlgmr.msra.gmra.mrb[4].mxu1 %vm605_vm1, %v4429_v20  ;;  %v586_v28 = vpop.permute.xlu1 %585 }
 0x1e1   :  { %v1237_v29 = vpop.permute.xlu0 %1236  ;;  %v596_v30 = vsel %vm593_vm0, %v584_v24, %v586_v28  ;;  %v595_v31 = vsel %vm593_vm0, %v586_v28, %v588_v25  ;;  %759 = vmatprep.mubr.f32.mxu1 %v4303_v8 }
 0x1e2   :  { %3396 = vrot.lane.b32.xlu1 %v4389_v11, %s4309_s15  ;;  %766 = vmatprep.subr.mxu0 %v595_v31 }
 0x1e3   :  { %767 = vmatpush1.msra.mxu0 %v596_v30  ;;  %v3827_v30 = vld [vmem:[%s4871_s2 + $0x40] sm:$0xff] }
 0x1e4   :  { %3794 = vmatmul.mubr.msk.f32.gmra.mrb[6].mxu1 %vm605_vm1, %v4442_v22  ;;  %3795 = vmatmul.mubr.msk.f32.vlgmr.msra.gmra.mrb[8].mxu0 %vm605_vm1, %v4429_v20  ;;  %v590_v32 = vpop.permute.xlu1 %589 }
 0x1e5   :  { %v1241_v33 = vpop.permute.xlu0 %1240  ;;  %926 = vmatprep.subr.mxu0 %v4371_v6  ;;  %v594_v34 = vsel %vm593_vm0, %v588_v25, %v590_v32  ;;  %v601_v35 = vsel %vm593_vm0, %v590_v32, %v4424_v19  ;;  %836 = vmatprep.mubr.f32.mxu0 %v4303_v8 }
 0x1e6   :  { %927 = vmatpush1.msra.mxu0 %v4367_v4  ;;  %843 = vmatprep.subr.mxu1 %v601_v35 }
 0x1e7   :  { %1080 = vmatprep.subr.mxu0 %v4386_v10  ;;  %844 = vmatpush1.msra.mxu1 %v594_v34 }
 0x1e8   :  { %907 = vmatprep.mubr.f32.mxu1 %v4303_v8  ;;  %3796 = vmatmul.mubr.msk.f32.gmra.mrb[10].mxu0 %vm605_vm1, %v4442_v22  ;;  %v1239_v36 = vpop.permute.xlu1 %1238 }
 0x1e9   :  { %v1235_v37 = vpop.permute.xlu0 %1234  ;;  %3797 = vmatmul.mubr.msk.f32.vlgmr.msra.gmra.mrb[8].mxu1 %vm605_vm1, %v4429_v20  ;;  %1003 = vmatprep.subr.mxu1 %v4374_v7  ;;  %v1256_v41 = vsel %vm1250_vm2, %v1237_v29, %v1239_v36  ;;  %v1255_v16 = vsel %vm1250_vm2, %v1239_v36, %v1241_v33  ;;  %v3828_v36 = vld [vmem:[%s4871_s2 + $0x48] sm:$0xff] }
 0x1ea   :  { %1004 = vmatpush1.msra.mxu1 %v4369_v5  ;;  %913 = vmatprep.mubr.f32.mxu1 %v4303_v8  ;;  %v1257_v49 = vsel %vm1250_vm2, %v1235_v37, %v1237_v29 }
 0x1eb   :  { %1157 = vmatprep.subr.mxu1 %v4389_v11  ;;  %990 = vmatprep.mubr.f32.mxu0 %v4303_v8 }
 0x1ec   :  { %3799 = vmatmul.mubr.msk.f32.vlgmr.msra.gmra.mrb[4].mxu0 %vm605_vm1, %v573_v38  ;;  %v1243_v39 = vpop.permute.xlu1 %1242  ;;  %3749 = vperm.xlu1 %4274, %v3741_v47  }
 0x1ed   :  { %v1247_v40 = vpop.permute.xlu0 %1246  ;;  %3798 = vmatmul.mubr.msk.f32.gmra.mrb[10].mxu1 %vm605_vm1, %v4442_v22  ;;  %1081 = vmatpush1.msra.mxu0 %v4381_v15  ;;  %v1254_v48 = vsel %vm1250_vm2, %v1241_v33, %v1243_v39 }
 0x1ee   :  { %1268 = vmatprep.subr.mxu0 %v1256_v41  ;;  %996 = vmatprep.mubr.f32.mxu0 %v4303_v8 }
 0x1ef   :  { %1067 = vmatprep.mubr.f32.mxu1 %v4303_v8 }
 0x1f0   :  { %3800 = vmatmul.mubr.msk.f32.gmra.mrb[6].mxu0 %vm605_vm1, %v574_v42  ;;  %v1245_v45 = vpop.permute.xlu1 %1244 }
 0x1f1   :  { %v1595_v46 = vpop.permute.xlu0 %1594  ;;  %3801 = vmatmul.mubr.msk.f32.vlgmr.msra.gmra.mrb[4].mxu1 %vm605_vm1, %v573_v38  ;;  %1144 = vmatprep.mubr.f32.mxu0 %v4303_v8  ;;  %v1252_v52 = vsel %vm1250_vm2, %v1245_v45, %v1247_v40  ;;  %v1253_v57 = vsel %vm1250_vm2, %v1243_v39, %v1245_v45 }
 0x1f2   :  { %1158 = vmatpush1.msra.mxu1 %v4383_v9  ;;  %1073 = vmatprep.mubr.f32.mxu1 %v4303_v8  ;;  %v3817_v9 = vld [vmem:[%s4871_s2 + $0x30] sm:$0xff] }
 0x1f3   :  { %1345 = vmatprep.subr.mxu1 %v1254_v48  ;;  %v3837_v48 = vld [vmem:[%s4871_s2 + $0x50] sm:$0xff] }
 0x1f4   :  { %3803 = vmatmul.mubr.msk.f32.vlgmr.msra.gmra.mrb[8].mxu0 %vm605_vm1, %v573_v38  ;;  %v1249_v50 = vpop.permute.xlu1 %1248 }
 0x1f5   :  { %v1599_v51 = vpop.permute.xlu0 %1598  ;;  %3802 = vmatmul.mubr.msk.f32.gmra.mrb[6].mxu1 %vm605_vm1, %v574_v42  ;;  %1269 = vmatpush1.msra.mxu0 %v1257_v49  ;;  %v1258_v56 = vsel %vm1250_vm2, %v1249_v50, %v1235_v37  ;;  %v1251_v63 = vsel %vm1250_vm2, %v1247_v40, %v1249_v50 }
 0x1f6   :  { %1422 = vmatprep.subr.mxu0 %v1252_v52  ;;  %1150 = vmatprep.mubr.f32.mxu0 %v4303_v8 }
 0x1f7   :  { %1221 = vmatprep.mubr.f32.mxu1 %v4303_v8 }
 0x1f8   :  { %3804 = vmatmul.mubr.msk.f32.gmra.mrb[10].mxu0 %vm605_vm1, %v574_v42  ;;  %v1597_v53 = vpop.permute.xlu1 %1596 }
 0x1f9   :  { %v1593_v54 = vpop.permute.xlu0 %1592  ;;  %3805 = vmatmul.mubr.msk.f32.vlgmr.msra.gmra.mrb[8].mxu1 %vm605_vm1, %v573_v38  ;;  %1332 = vmatprep.mubr.f32.mxu0 %v4303_v8  ;;  %v1614_v60 = vsel %vm1608_vm3, %v1595_v46, %v1597_v53  ;;  %v1613_v7 = vsel %vm1608_vm3, %v1597_v53, %v1599_v51 }
 0x1fa   :  { %1346 = vmatpush1.msra.mxu1 %v1255_v16  ;;  %1227 = vmatprep.mubr.f32.mxu1 %v4303_v8  ;;  %v1615_v2 = vsel %vm1608_vm3, %v1593_v54, %v1595_v46  ;;  %v3838_v16 = vld [vmem:[%s4871_s2 + $0x58] sm:$0xff] }
 0x1fb   :  { %1499 = vmatprep.subr.mxu1 %v1258_v56 }
 0x1fc   :  { %3809 = vmatmul.mubr.msk.f32.vlgmr.msra.gmra.mrb[4].mxu0 %vm605_vm1, %v3807_v55  ;;  %v1601_v58 = vpop.permute.xlu1 %1600 }
 0x1fd   :  { %v1605_v59 = vpop.permute.xlu0 %1604  ;;  %3806 = vmatmul.mubr.msk.f32.gmra.mrb[10].mxu1 %vm605_vm1, %v574_v42  ;;  %1423 = vmatpush1.msra.mxu0 %v1253_v57  ;;  %v1612_v1 = vsel %vm1608_vm3, %v1599_v51, %v1601_v58 }
 0x1fe   :  { %1626 = vmatprep.subr.mxu0 %v1614_v60  ;;  %1338 = vmatprep.mubr.f32.mxu0 %v4303_v8 }
 0x1ff   :  { %1409 = vmatprep.mubr.f32.mxu1 %v4303_v8 }
 0x200   :  { %3810 = vmatmul.mubr.msk.f32.gmra.mrb[6].mxu0 %vm605_vm1, %v3808_v61  ;;  %v1603_v62 = vpop.permute.xlu1 %1602 }
 0x201   :  { %v1953_v0 = vpop.permute.xlu0 %1952  ;;  %3811 = vmatmul.mubr.msk.f32.vlgmr.msra.gmra.mrb[4].mxu1 %vm605_vm1, %v3807_v55  ;;  %1486 = vmatprep.mubr.f32.mxu0 %v4303_v8  ;;  %v1610_v5 = vsel %vm1608_vm3, %v1603_v62, %v1605_v59  ;;  %v1611_v11 = vsel %vm1608_vm3, %v1601_v58, %v1603_v62 }
 0x202   :  { %1500 = vmatpush1.msra.mxu1 %v1251_v63  ;;  %1415 = vmatprep.mubr.f32.mxu1 %v4303_v8 }
 0x203   :  { %1703 = vmatprep.subr.mxu1 %v1612_v1  ;;  %v3847_v1 = vld [vmem:[%s4871_s2 + $0x60] sm:$0xff] }
 0x204   :  { %3813 = vmatmul.mubr.msk.f32.vlgmr.msra.gmra.mrb[8].mxu0 %vm605_vm1, %v3807_v55  ;;  %v1607_v3 = vpop.permute.xlu1 %1606 }
 0x205   :  { %v1957_v4 = vpop.permute.xlu0 %1956  ;;  %3812 = vmatmul.mubr.msk.f32.gmra.mrb[6].mxu1 %vm605_vm1, %v3808_v61  ;;  %1627 = vmatpush1.msra.mxu0 %v1615_v2  ;;  %v1616_v10 = vsel %vm1608_vm3, %v1607_v3, %v1593_v54  ;;  %v1609_v20 = vsel %vm1608_vm3, %v1605_v59, %v1607_v3 }
 0x206   :  { %1780 = vmatprep.subr.mxu0 %v1610_v5  ;;  %1492 = vmatprep.mubr.f32.mxu0 %v4303_v8 }
 0x207   :  { %1563 = vmatprep.mubr.f32.mxu1 %v4303_v8 }
 0x208   :  { %3814 = vmatmul.mubr.msk.f32.gmra.mrb[10].mxu0 %vm605_vm1, %v3808_v61  ;;  %v1955_v6 = vpop.permute.xlu1 %1954 }
 0x209   :  { %v1951_v15 = vpop.permute.xlu0 %1950  ;;  %3815 = vmatmul.mubr.msk.f32.vlgmr.msra.gmra.mrb[8].mxu1 %vm605_vm1, %v3807_v55  ;;  %1690 = vmatprep.mubr.f32.mxu0 %v4303_v8  ;;  %v1972_v17 = vsel %vm1966_vm4, %v1953_v0, %v1955_v6  ;;  %v1971_v28 = vsel %vm1966_vm4, %v1955_v6, %v1957_v4 }
 0x20a   :  { %1704 = vmatpush1.msra.mxu1 %v1613_v7  ;;  %1569 = vmatprep.mubr.f32.mxu1 %v4303_v8  ;;  %v1973_v23 = vsel %vm1966_vm4, %v1951_v15, %v1953_v0  ;;  %v3848_v7 = vld [vmem:[%s4871_s2 + $0x68] sm:$0xff] }
 0x20b   :  { %1857 = vmatprep.subr.mxu1 %v1616_v10 }
 0x20c   :  { %3819 = vmatmul.mubr.msk.f32.vlgmr.msra.gmra.mrb[4].mxu0 %vm605_vm1, %v3817_v9  ;;  %v1959_v12 = vpop.permute.xlu1 %1958 }
 0x20d   :  { %v1963_v14 = vpop.permute.xlu0 %1962  ;;  %3816 = vmatmul.mubr.msk.f32.gmra.mrb[10].mxu1 %vm605_vm1, %v3808_v61  ;;  %1781 = vmatpush1.msra.mxu0 %v1611_v11  ;;  %v1970_v22 = vsel %vm1966_vm4, %v1957_v4, %v1959_v12 }
 0x20e   :  { %1984 = vmatprep.subr.mxu0 %v1972_v17  ;;  %1696 = vmatprep.mubr.f32.mxu0 %v4303_v8 }
 0x20f   :  { %1767 = vmatprep.mubr.f32.mxu1 %v4303_v8 }
 0x210   :  { %3820 = vmatmul.mubr.msk.f32.gmra.mrb[6].mxu0 %vm605_vm1, %v3818_v18  ;;  %v1961_v19 = vpop.permute.xlu1 %1960 }
 0x211   :  { %v2311_v21 = vpop.permute.xlu0 %2310  ;;  %3821 = vmatmul.mubr.msk.f32.vlgmr.msra.gmra.mrb[4].mxu1 %vm605_vm1, %v3817_v9  ;;  %1844 = vmatprep.mubr.f32.mxu0 %v4303_v8  ;;  %v1968_v26 = vsel %vm1966_vm4, %v1961_v19, %v1963_v14  ;;  %v1969_v32 = vsel %vm1966_vm4, %v1959_v12, %v1961_v19 }
 0x212   :  { %1858 = vmatpush1.msra.mxu1 %v1609_v20  ;;  %1773 = vmatprep.mubr.f32.mxu1 %v4303_v8 }
 0x213   :  { %2061 = vmatprep.subr.mxu1 %v1970_v22 }
 0x214   :  { %3823 = vmatmul.mubr.msk.f32.vlgmr.msra.gmra.mrb[8].mxu0 %vm605_vm1, %v3817_v9  ;;  %v1965_v24 = vpop.permute.xlu1 %1964 }
 0x215   :  { %v2315_v25 = vpop.permute.xlu0 %2314  ;;  %3822 = vmatmul.mubr.msk.f32.gmra.mrb[6].mxu1 %vm605_vm1, %v3818_v18  ;;  %1985 = vmatpush1.msra.mxu0 %v1973_v23  ;;  %v1974_v31 = vsel %vm1966_vm4, %v1965_v24, %v1951_v15  ;;  %v1967_v38 = vsel %vm1966_vm4, %v1963_v14, %v1965_v24 }
 0x216   :  { %2138 = vmatprep.subr.mxu0 %v1968_v26  ;;  %1850 = vmatprep.mubr.f32.mxu0 %v4303_v8  ;;  %v3858_v26 = vld [vmem:[%s4871_s2 + $0x78] sm:$0xff] }
 0x217   :  { %1921 = vmatprep.mubr.f32.mxu1 %v4303_v8 }
 0x218   :  { %3824 = vmatmul.mubr.msk.f32.gmra.mrb[10].mxu0 %vm605_vm1, %v3818_v18  ;;  %v2313_v27 = vpop.permute.xlu1 %2312 }
 0x219   :  { %v2309_v29 = vpop.permute.xlu0 %2308  ;;  %3825 = vmatmul.mubr.msk.f32.vlgmr.msra.gmra.mrb[8].mxu1 %vm605_vm1, %v3817_v9  ;;  %2048 = vmatprep.mubr.f32.mxu0 %v4303_v8  ;;  %v2330_v35 = vsel %vm2324_vm5, %v2311_v21, %v2313_v27  ;;  %v2329_v46 = vsel %vm2324_vm5, %v2313_v27, %v2315_v25 }
 0x21a   :  { %2062 = vmatpush1.msra.mxu1 %v1971_v28  ;;  %1927 = vmatprep.mubr.f32.mxu1 %v4303_v8  ;;  %v2331_v41 = vsel %vm2324_vm5, %v2309_v29, %v2311_v21  ;;  %v3857_v21 = vld [vmem:[%s4871_s2 + $0x70] sm:$0xff] }
 0x21b   :  { %2215 = vmatprep.subr.mxu1 %v1974_v31 }
 0x21c   :  { %3829 = vmatmul.mubr.msk.f32.vlgmr.msra.gmra.mrb[4].mxu0 %vm605_vm1, %v3827_v30  ;;  %v2317_v33 = vpop.permute.xlu1 %2316 }
 0x21d   :  { %v2321_v34 = vpop.permute.xlu0 %2320  ;;  %3826 = vmatmul.mubr.msk.f32.gmra.mrb[10].mxu1 %vm605_vm1, %v3818_v18  ;;  %2139 = vmatpush1.msra.mxu0 %v1969_v32  ;;  %v2328_v40 = vsel %vm2324_vm5, %v2315_v25, %v2317_v33 }
 0x21e   :  { %2342 = vmatprep.subr.mxu0 %v2330_v35  ;;  %2054 = vmatprep.mubr.f32.mxu0 %v4303_v8 }
 0x21f   :  { %2125 = vmatprep.mubr.f32.mxu1 %v4303_v8 }
 0x220   :  { %3830 = vmatmul.mubr.msk.f32.gmra.mrb[6].mxu0 %vm605_vm1, %v3828_v36  ;;  %v2319_v37 = vpop.permute.xlu1 %2318 }
 0x221   :  { %v2669_v39 = vpop.permute.xlu0 %2668  ;;  %3831 = vmatmul.mubr.msk.f32.vlgmr.msra.gmra.mrb[4].mxu1 %vm605_vm1, %v3827_v30  ;;  %2202 = vmatprep.mubr.f32.mxu0 %v4303_v8  ;;  %v2326_v44 = vsel %vm2324_vm5, %v2319_v37, %v2321_v34  ;;  %v2327_v50 = vsel %vm2324_vm5, %v2317_v33, %v2319_v37 }
 0x222   :  { %2216 = vmatpush1.msra.mxu1 %v1967_v38  ;;  %2131 = vmatprep.mubr.f32.mxu1 %v4303_v8 }
 0x223   :  { %2419 = vmatprep.subr.mxu1 %v2328_v40 }
 0x224   :  { %3833 = vmatmul.mubr.msk.f32.vlgmr.msra.gmra.mrb[8].mxu0 %vm605_vm1, %v3827_v30  ;;  %v2323_v42 = vpop.permute.xlu1 %2322 }
 0x225   :  { %v2673_v43 = vpop.permute.xlu0 %2672  ;;  %3832 = vmatmul.mubr.msk.f32.gmra.mrb[6].mxu1 %vm605_vm1, %v3828_v36  ;;  %2343 = vmatpush1.msra.mxu0 %v2331_v41  ;;  %v2332_v49 = vsel %vm2324_vm5, %v2323_v42, %v2309_v29  ;;  %v2325_v55 = vsel %vm2324_vm5, %v2321_v34, %v2323_v42 }
 0x226   :  { %2496 = vmatprep.subr.mxu0 %v2326_v44  ;;  %2208 = vmatprep.mubr.f32.mxu0 %v4303_v8 }
 0x227   :  { %2279 = vmatprep.mubr.f32.mxu1 %v4303_v8 }
 0x228   :  { %3834 = vmatmul.mubr.msk.f32.gmra.mrb[10].mxu0 %vm605_vm1, %v3828_v36  ;;  %v2671_v45 = vpop.permute.xlu1 %2670 }
 0x229   :  { %v2667_v47 = vpop.permute.xlu0 %2666  ;;  %3835 = vmatmul.mubr.msk.f32.vlgmr.msra.gmra.mrb[8].mxu1 %vm605_vm1, %v3827_v30  ;;  %2406 = vmatprep.mubr.f32.mxu0 %v4303_v8  ;;  %v2688_v53 = vsel %vm2682_vm6, %v2669_v39, %v2671_v45  ;;  %v2687_v63 = vsel %vm2682_vm6, %v2671_v45, %v2673_v43 }
 0x22a   :  { %2420 = vmatpush1.msra.mxu1 %v2329_v46  ;;  %2285 = vmatprep.mubr.f32.mxu1 %v4303_v8  ;;  %v2689_v58 = vsel %vm2682_vm6, %v2667_v47, %v2669_v39  ;;  %v3868_v39 = vld [vmem:[%s4871_s2 + $0x88] sm:$0xff] }
 0x22b   :  { %2573 = vmatprep.subr.mxu1 %v2332_v49 }
 0x22c   :  { %3839 = vmatmul.mubr.msk.f32.vlgmr.msra.gmra.mrb[4].mxu0 %vm605_vm1, %v3837_v48  ;;  %v2675_v51 = vpop.permute.xlu1 %2674 }
 0x22d   :  { %v2679_v52 = vpop.permute.xlu0 %2678  ;;  %3836 = vmatmul.mubr.msk.f32.gmra.mrb[10].mxu1 %vm605_vm1, %v3828_v36  ;;  %2497 = vmatpush1.msra.mxu0 %v2327_v50  ;;  %v2686_v57 = vsel %vm2682_vm6, %v2673_v43, %v2675_v51  ;;  %v3867_v36 = vld [vmem:[%s4871_s2 + $0x80] sm:$0xff] }
 0x22e   :  { %2700 = vmatprep.subr.mxu0 %v2688_v53  ;;  %2412 = vmatprep.mubr.f32.mxu0 %v4303_v8 }
 0x22f   :  { %2483 = vmatprep.mubr.f32.mxu1 %v4303_v8 }
 0x230   :  { %3840 = vmatmul.mubr.msk.f32.gmra.mrb[6].mxu0 %vm605_vm1, %v3838_v16  ;;  %v2677_v54 = vpop.permute.xlu1 %2676 }
 0x231   :  { %v3027_v56 = vpop.permute.xlu0 %3026  ;;  %3841 = vmatmul.mubr.msk.f32.vlgmr.msra.gmra.mrb[4].mxu1 %vm605_vm1, %v3837_v48  ;;  %2560 = vmatprep.mubr.f32.mxu0 %v4303_v8  ;;  %v2684_v61 = vsel %vm2682_vm6, %v2677_v54, %v2679_v52  ;;  %v2685_v3 = vsel %vm2682_vm6, %v2675_v51, %v2677_v54 }
 0x232   :  { %2574 = vmatpush1.msra.mxu1 %v2325_v55  ;;  %2489 = vmatprep.mubr.f32.mxu1 %v4303_v8 }
 0x233   :  { %2777 = vmatprep.subr.mxu1 %v2686_v57 }
 0x234   :  { %3843 = vmatmul.mubr.msk.f32.vlgmr.msra.gmra.mrb[8].mxu0 %vm605_vm1, %v3837_v48  ;;  %v2681_v59 = vpop.permute.xlu1 %2680 }
 0x235   :  { %v3031_v60 = vpop.permute.xlu0 %3030  ;;  %3842 = vmatmul.mubr.msk.f32.gmra.mrb[6].mxu1 %vm605_vm1, %v3838_v16  ;;  %2701 = vmatpush1.msra.mxu0 %v2689_v58  ;;  %v2690_v2 = vsel %vm2682_vm6, %v2681_v59, %v2667_v47  ;;  %v2683_v9 = vsel %vm2682_vm6, %v2679_v52, %v2681_v59 }
 0x236   :  { %2854 = vmatprep.subr.mxu0 %v2684_v61  ;;  %2566 = vmatprep.mubr.f32.mxu0 %v4303_v8 }
 0x237   :  { %2637 = vmatprep.mubr.f32.mxu1 %v4303_v8 }
 0x238   :  { %3844 = vmatmul.mubr.msk.f32.gmra.mrb[10].mxu0 %vm605_vm1, %v3838_v16  ;;  %v3029_v62 = vpop.permute.xlu1 %3028 }
 0x239   :  { %v3025_v0 = vpop.permute.xlu0 %3024  ;;  %3845 = vmatmul.mubr.msk.f32.vlgmr.msra.gmra.mrb[8].mxu1 %vm605_vm1, %v3837_v48  ;;  %2764 = vmatprep.mubr.f32.mxu0 %v4303_v8  ;;  %v3046_v6 = vsel %vm3040_vm7, %v3027_v56, %v3029_v62  ;;  %v3045_v20 = vsel %vm3040_vm7, %v3029_v62, %v3031_v60 }
 0x23a   :  { %2778 = vmatpush1.msra.mxu1 %v2687_v63  ;;  %2643 = vmatprep.mubr.f32.mxu1 %v4303_v8  ;;  %v3047_v12 = vsel %vm3040_vm7, %v3025_v0, %v3027_v56 }
 0x23b   :  { %2931 = vmatprep.subr.mxu1 %v2690_v2 }
 0x23c   :  { %3849 = vmatmul.mubr.msk.f32.vlgmr.msra.gmra.mrb[4].mxu0 %vm605_vm1, %v3847_v1  ;;  %v3033_v4 = vpop.permute.xlu1 %3032 }
 0x23d   :  { %v3037_v5 = vpop.permute.xlu0 %3036  ;;  %3846 = vmatmul.mubr.msk.f32.gmra.mrb[10].mxu1 %vm605_vm1, %v3838_v16  ;;  %2855 = vmatpush1.msra.mxu0 %v2685_v3  ;;  %v3044_v11 = vsel %vm3040_vm7, %v3031_v60, %v3033_v4 }
 0x23e   :  { %3058 = vmatprep.subr.mxu0 %v3046_v6  ;;  %2770 = vmatprep.mubr.f32.mxu0 %v4303_v8 }
 0x23f   :  { %2841 = vmatprep.mubr.f32.mxu1 %v4303_v8 }
 0x240   :  { %3850 = vmatmul.mubr.msk.f32.gmra.mrb[6].mxu0 %vm605_vm1, %v3848_v7  ;;  %v3035_v15 = vpop.permute.xlu1 %3034 }
 0x241   :  { %3851 = vmatmul.mubr.msk.f32.vlgmr.msra.gmra.mrb[4].mxu1 %vm605_vm1, %v3847_v1  ;;  %2918 = vmatprep.mubr.f32.mxu0 %v4303_v8  ;;  %v3385_v10 = vpop.permute.xlu0 %3384  ;;  %v3042_v17 = vsel %vm3040_vm7, %v3035_v15, %v3037_v5  ;;  %v3043_v23 = vsel %vm3040_vm7, %v3033_v4, %v3035_v15 }
 0x242   :  { %2932 = vmatpush1.msra.mxu1 %v2683_v9  ;;  %2847 = vmatprep.mubr.f32.mxu1 %v4303_v8 }
 0x243   :  { %3135 = vmatprep.subr.mxu1 %v3044_v11 }
 0x244   :  { %3853 = vmatmul.mubr.msk.f32.vlgmr.msra.gmra.mrb[8].mxu0 %vm605_vm1, %v3847_v1  ;;  %v3039_v14 = vpop.permute.xlu1 %3038 }
 0x245   :  { %3852 = vmatmul.mubr.msk.f32.gmra.mrb[6].mxu1 %vm605_vm1, %v3848_v7  ;;  %3059 = vmatpush1.msra.mxu0 %v3047_v12  ;;  %v3389_v18 = vpop.permute.xlu0 %3388  ;;  %v3048_v22 = vsel %vm3040_vm7, %v3039_v14, %v3025_v0  ;;  %v3041_v28 = vsel %vm3040_vm7, %v3037_v5, %v3039_v14 }
 0x246   :  { %3212 = vmatprep.subr.mxu0 %v3042_v17  ;;  %2924 = vmatprep.mubr.f32.mxu0 %v4303_v8 }
 0x247   :  { %2995 = vmatprep.mubr.f32.mxu1 %v4303_v8 }
 0x248   :  { %3854 = vmatmul.mubr.msk.f32.gmra.mrb[10].mxu0 %vm605_vm1, %v3848_v7  ;;  %v3387_v19 = vpop.permute.xlu1 %3386 }
 0x249   :  { %3855 = vmatmul.mubr.msk.f32.vlgmr.msra.gmra.mrb[8].mxu1 %vm605_vm1, %v3847_v1  ;;  %3122 = vmatprep.mubr.f32.mxu0 %v4303_v8  ;;  %v3404_v25 = vsel %vm3398_vm8, %v3385_v10, %v3387_v19  ;;  %v3383_v27 = vpop.permute.xlu0 %3382  ;;  %v3403_v35 = vsel %vm3398_vm8, %v3387_v19, %v3389_v18 }
 0x24a   :  { %3136 = vmatpush1.msra.mxu1 %v3045_v20  ;;  %3001 = vmatprep.mubr.f32.mxu1 %v4303_v8  ;;  %v3405_v31 = vsel %vm3398_vm8, %v3383_v27, %v3385_v10 }
 0x24b   :  { %3289 = vmatprep.subr.mxu1 %v3048_v22 }
 0x24c   :  { %3859 = vmatmul.mubr.msk.f32.vlgmr.msra.gmra.mrb[4].mxu0 %vm605_vm1, %v3857_v21  ;;  %v3391_v24 = vpop.permute.xlu1 %3390 }
 0x24d   :  { %3856 = vmatmul.mubr.msk.f32.gmra.mrb[10].mxu1 %vm605_vm1, %v3848_v7  ;;  %3213 = vmatpush1.msra.mxu0 %v3043_v23  ;;  %v3402_v30 = vsel %vm3398_vm8, %v3389_v18, %v3391_v24  ;;  %v3395_v32 = vpop.permute.xlu0 %3394 }
 0x24e   :  { %3416 = vmatprep.subr.mxu0 %v3404_v25  ;;  %3128 = vmatprep.mubr.f32.mxu0 %v4303_v8 }
 0x24f   :  { %3199 = vmatprep.mubr.f32.mxu1 %v4303_v8 }
 0x250   :  { %3860 = vmatmul.mubr.msk.f32.gmra.mrb[6].mxu0 %vm605_vm1, %v3858_v26  ;;  %v3393_v29 = vpop.permute.xlu1 %3392 }
 0x251   :  { %3861 = vmatmul.mubr.msk.f32.vlgmr.msra.gmra.mrb[4].mxu1 %vm605_vm1, %v3857_v21  ;;  %3276 = vmatprep.mubr.f32.mxu0 %v4303_v8  ;;  %v3400_v33 = vsel %vm3398_vm8, %v3393_v29, %v3395_v32  ;;  %v3401_v38 = vsel %vm3398_vm8, %v3391_v24, %v3393_v29 }
 0x252   :  { %3290 = vmatpush1.msra.mxu1 %v3041_v28  ;;  %3205 = vmatprep.mubr.f32.mxu1 %v4303_v8 }
 0x253   :  { %3493 = vmatprep.subr.mxu1 %v3402_v30 }
 0x254   :  { %3863 = vmatmul.mubr.msk.f32.vlgmr.msra.gmra.mrb[8].mxu0 %vm605_vm1, %v3857_v21  ;;  %v3397_v34 = vpop.permute.xlu1 %3396 }
 0x255   :  { %3862 = vmatmul.mubr.msk.f32.gmra.mrb[6].mxu1 %vm605_vm1, %v3858_v26  ;;  %3417 = vmatpush1.msra.mxu0 %v3405_v31  ;;  %v3406_v37 = vsel %vm3398_vm8, %v3397_v34, %v3383_v27  ;;  %v3399_v40 = vsel %vm3398_vm8, %v3395_v32, %v3397_v34 }
 0x256   :  { %3570 = vmatprep.subr.mxu0 %v3400_v33  ;;  %3282 = vmatprep.mubr.f32.mxu0 %v4303_v8 }
 0x257   :  { %3353 = vmatprep.mubr.f32.mxu1 %v4303_v8 }
 0x258   :  { %3864 = vmatmul.mubr.msk.f32.gmra.mrb[10].mxu0 %vm605_vm1, %v3858_v26 }
 0x259   :  { %3865 = vmatmul.mubr.msk.f32.vlgmr.msra.gmra.mrb[8].mxu1 %vm605_vm1, %v3857_v21  ;;  %3480 = vmatprep.mubr.f32.mxu0 %v4303_v8 }
 0x25a   :  { %3494 = vmatpush1.msra.mxu1 %v3403_v35  ;;  %3359 = vmatprep.mubr.f32.mxu1 %v4303_v8 }
 0x25b   :  { %3647 = vmatprep.subr.mxu1 %v3406_v37 }
 0x25c   :  { %3869 = vmatmul.mubr.msk.f32.vlgmr.msra.gmra.mrb[4].mxu0 %vm605_vm1, %v3867_v36 }
 0x25d   :  { %3866 = vmatmul.mubr.msk.f32.gmra.mrb[10].mxu1 %vm605_vm1, %v3858_v26  ;;  %3571 = vmatpush1.msra.mxu0 %v3401_v38 }
 0x25e   :  { %3486 = vmatprep.mubr.f32.mxu0 %v4303_v8  ;;  %3557 = vmatprep.mubr.f32.mxu1 %v4303_v8  ;;  %v3745_v13 = vpop.permute.xlu0 %3744 }
 0x260   :  { %3870 = vmatmul.mubr.msk.f32.gmra.mrb[6].mxu0 %vm605_vm1, %v3868_v39 }
 0x261   :  { %3871 = vmatmul.mubr.msk.f32.vlgmr.msra.gmra.mrb[4].mxu1 %vm605_vm1, %v3867_v36  ;;  %3634 = vmatprep.mubr.f32.mxu0 %v4303_v8 }
 0x262   :  { %3648 = vmatpush1.msra.mxu1 %v3399_v40  ;;  %3563 = vmatprep.mubr.f32.mxu1 %v4303_v8 }
 0x264   :  { %3873 = vmatmul.mubr.msk.f32.vlgmr.msra.gmra.mrb[8].mxu0 %vm605_vm1, %v3867_v36 }
 0x265   :  { %3872 = vmatmul.mubr.msk.f32.gmra.mrb[6].mxu1 %vm605_vm1, %v3868_v39  ;;  %3640 = vmatprep.mubr.f32.mxu0 %v4303_v8 }
 0x266   :  { %3711 = vmatprep.mubr.f32.mxu1 %v4303_v8 }
 0x268   :  { %3874 = vmatmul.mubr.msk.f32.gmra.mrb[10].mxu0 %vm605_vm1, %v3868_v39 }
 0x269   :  { %3875 = vmatmul.mubr.msk.f32.vlgmr.msra.gmra.mrb[8].mxu1 %vm605_vm1, %v3867_v36 }
 0x26a   :  { %3717 = vmatprep.mubr.f32.mxu1 %v4303_v8 }
 0x26b   :  { %v3750_v45 = vpop.permute.xlu1 %3749 }
 0x26d   :  { %3876 = vmatmul.mubr.msk.f32.gmra.mrb[10].mxu1 %vm605_vm1, %v3868_v39 }
 0x32f   :  { %v3482_v41 = vpop.f32.mrb[4].mxu0 }
 0x330   :  { %v3752_v42 = vadd.f32 %v3745_v13, %v3482_v41  ;;  %v3484_v43 = vpop.f32.mrb[5].mxu0 }
 0x331   :  { %v3753_v44 = vadd.f32 %v3745_v13, %v3484_v43 }
 0x332   :  { %3768 = vst [vmem:[%s4873_s4] sm:$0xff] %v3752_v42 }
 0x333   :  { %3769 = vst [vmem:[%s4873_s4 + $0x8] sm:$0xff] %v3753_v44  ;;  %v3488_v46 = vpop.f32.mrb[6].mxu0 }
 0x334   :  { %v3559_v47 = vpop.f32.mrb[4].mxu1  ;;  %v3760_v48 = vadd.f32 %v3750_v45, %v3488_v46  ;;  %v3490_v8 = vpop.f32.mrb[7].mxu0 }
 0x335   :  { %v3754_v49 = vadd.f32 %v3745_v13, %v3559_v47  ;;  %v3761_v50 = vadd.f32 %v3750_v45, %v3490_v8  ;;  %v3561_v51 = vpop.f32.mrb[5].mxu1 }
 0x336   :  { %3776 = vst [vmem:[%s4873_s4 + $0x40] sm:$0xff] %v3760_v48  ;;  %v3755_v52 = vadd.f32 %v3745_v13, %v3561_v51 }
 0x337   :  { %3770 = vst [vmem:[%s4873_s4 + $0x10] sm:$0xff] %v3754_v49  ;;  %3777 = vst [vmem:[%s4873_s4 + $0x48] sm:$0xff] %v3761_v50  ;;  %v3636_v53 = vpop.f32.mrb[8].mxu0 }
 0x338   :  { %3771 = vst [vmem:[%s4873_s4 + $0x18] sm:$0xff] %v3755_v52  ;;  %v3565_v16 = vpop.f32.mrb[6].mxu1  ;;  %v3756_v54 = vadd.f32 %v3745_v13, %v3636_v53  ;;  %v3638_v55 = vpop.f32.mrb[9].mxu0 }
 0x339   :  { %v3762_v56 = vadd.f32 %v3750_v45, %v3565_v16  ;;  %v3567_v57 = vpop.f32.mrb[7].mxu1  ;;  %v3757_v58 = vadd.f32 %v3745_v13, %v3638_v55 }
 0x33a   :  { %3772 = vst [vmem:[%s4873_s4 + $0x20] sm:$0xff] %v3756_v54  ;;  %v3763_v59 = vadd.f32 %v3750_v45, %v3567_v57 }
 0x33b   :  { %3778 = vst [vmem:[%s4873_s4 + $0x50] sm:$0xff] %v3762_v56  ;;  %3773 = vst [vmem:[%s4873_s4 + $0x28] sm:$0xff] %v3757_v58  ;;  %v3642_v60 = vpop.f32.mrb[10].mxu0 }
 0x33c   :  { %3779 = vst [vmem:[%s4873_s4 + $0x58] sm:$0xff] %v3763_v59  ;;  %v3764_v61 = vadd.f32 %v3750_v45, %v3642_v60  ;;  %v3713_v62 = vpop.f32.mrb[8].mxu1  ;;  %v3644_v63 = vpop.f32.mrb[11].mxu0 }
 0x33d   :  { %v3758_v0 = vadd.f32 %v3745_v13, %v3713_v62  ;;  %v3765_v1 = vadd.f32 %v3750_v45, %v3644_v63  ;;  %v3715_v2 = vpop.f32.mrb[9].mxu1 }
 0x33e   :  { %3780 = vst [vmem:[%s4873_s4 + $0x60] sm:$0xff] %v3764_v61  ;;  %v3759_v3 = vadd.f32 %v3745_v13, %v3715_v2 }
 0x33f   :  { %3774 = vst [vmem:[%s4873_s4 + $0x30] sm:$0xff] %v3758_v0  ;;  %3781 = vst [vmem:[%s4873_s4 + $0x68] sm:$0xff] %v3765_v1 }
 0x340   :  { %3775 = vst [vmem:[%s4873_s4 + $0x38] sm:$0xff] %v3759_v3  ;;  %v3719_v4 = vpop.f32.mrb[10].mxu1 }
 0x341   :  { %v3766_v5 = vadd.f32 %v3750_v45, %v3719_v4  ;;  %v3721_v6 = vpop.f32.mrb[11].mxu1 }
 0x342   :  { %v3767_v7 = vadd.f32 %v3750_v45, %v3721_v6 }
 0x343   :  { %3782 = vst [vmem:[%s4873_s4 + $0x70] sm:$0xff] %v3766_v5 }
 0x344   :  { %3783 = vst [vmem:[%s4873_s4 + $0x78] sm:$0xff] %v3767_v7 }
 0x345   :  { %3788 = vsyncpa [#allocation3], 1 }

</bundles_post_ra>
